<compile_context>
chip_gen: v7x
topology: tpu7x:2x2x1
jax: 0.10.0
libtpu: 0.0.40
codegen_flags: <defaults>
</compile_context>

<pallas_src>
import functools

import jax
import jax.numpy as jnp
from jax.experimental import pallas as pl
from jax.experimental.pallas import tpu as pltpu


# ----------------------------------------------------------------------------
# Pallas kernel: one batch block (b_blk batch elements, L = b_blk*T*V lanes) per step.
# ----------------------------------------------------------------------------
def _st_gcn_kernel(K, C_out, KT, pad, TV, b_blk, compute_dtype,
                   x_ref, a_ref, w_ref, b_ref, shift1_ref,
                   wt_ref, bt_ref, smat_ref, o_ref, s_ref):
    cdt = compute_dtype
    xf = x_ref[...]                                            # (C_in, L)

    # Stacked 1x1 convs: first K*C_out rows = gcn conv (bn1 scale folded),
    # last C_out rows = residual conv (bn3 folded).  One MXU matmul, f32 accumulate.
    y = jnp.dot(w_ref[...], xf, preferred_element_type=jnp.float32) + b_ref[...]
    res = y[K * C_out:, :]                                     # (C_out, L) f32

    # Graph contraction per 128-lane (T*V) sub-block against the fixed (TV,TV)
    # kron(I_T, A[k]) blocks; static 128-aligned lane slices, 8-aligned row slices.
    for b in range(b_blk):
        lo = b * TV
        acc = jnp.dot(y[0:C_out, lo:lo + TV].astype(cdt), a_ref[0],
                      preferred_element_type=jnp.float32)
        for k in range(1, K):
            acc = acc + jnp.dot(y[k * C_out:(k + 1) * C_out, lo:lo + TV].astype(cdt),
                                a_ref[k], preferred_element_type=jnp.float32)
        s_ref[:, lo:lo + TV] = acc

    # bn1 shift + ReLU (bn1 scale already folded into the gcn weights).
    h = jnp.maximum(s_ref[...] + shift1_ref[...], 0.0)         # (C_out, L) f32

    # Temporal conv: ALL KT taps in one stacked channel matmul (KT*C_out, C_out)@(C_out,L).
    tall = jnp.dot(wt_ref[...], h.astype(cdt),
                   preferred_element_type=jnp.float32)         # (KT*C_out, L) f32

    # Per-tap temporal shift + zero padding as a 0/1 (TV,TV) matmul per sub-block
    # (replaces pltpu.roll + iota mask; MXU has plenty of slack, VPU/XLU work removed).
    bt = bt_ref[...]                                           # (C_out, 1)
    for b in range(b_blk):
        lo = b * TV
        tout = tall[pad * C_out:(pad + 1) * C_out, lo:lo + TV]  # center tap, no shift
        for dt in range(KT):                                    # KT is small & static
            if dt == pad:
                continue
            u = tall[dt * C_out:(dt + 1) * C_out, lo:lo + TV].astype(cdt)
            tout = tout + jnp.dot(u, smat_ref[dt], preferred_element_type=jnp.float32)
        # bn2 folded bias + residual add + final ReLU; 128-lane aligned store.
        o_ref[:, lo:lo + TV] = jnp.maximum(
            tout + bt + res[:, lo:lo + TV], 0.0).astype(o_ref.dtype)


# ----------------------------------------------------------------------------
# Batch-block selection: L = b_blk*TV in ~[128, max_lanes], prefer >=2 grid steps
# so v7x's two TensorCores both get work under dimension_semantics=("parallel",).
# ----------------------------------------------------------------------------
def _pick_b_blk(N, TV, max_lanes=1024):
    divs = [d for d in range(1, N + 1) if N % d == 0]
    cands = [d for d in divs if d * TV <= max_lanes and N // d >= 2]
    if not cands:
        cands = [d for d in divs if d * TV <= max_lanes] or [1]
    return max(cands)


# ----------------------------------------------------------------------------
# Wrapper: host-side BN folding / weight stacking / small graph + shift operators.
# ----------------------------------------------------------------------------
def st_gcn_forward(x, A, params, *, b_blk=None, compute_dtype=jnp.float32,
                   lane_dense_out=False):
    """x: (N, C_in, T, V) float32, A: (K, V, V) float32."""
    N, C_in, T, V = x.shape
    K = A.shape[0]
    (wg, bg, bn1s, bn1b, wt, bt, bn2s, bn2b, wr, br, bn3s, bn3b) = params
    C_out = wr.shape[0]
    KT = wt.shape[0]
    pad = (KT - 1) // 2
    TV = T * V

    # Alignment assumptions behind the lane-dense layout / static slices.
    assert KT % 2 == 1, "temporal kernel must be odd (module asserts this too)"
    assert TV % 128 == 0, "lane-dense layout needs T*V to be a multiple of 128"
    assert C_out % 8 == 0 and (K * C_out) % 8 == 0, "row groups must be sublane aligned"

    if b_blk is None:
        b_blk = _pick_b_blk(N, TV)
    assert N % b_blk == 0
    L = b_blk * TV
    steps = N // b_blk

    # ---- Fold eval-mode BatchNorms into adjacent linear weights (host side).
    scale1 = bn1s.reshape(-1)
    shift1 = bn1b.reshape(C_out, 1)
    scale2 = bn2s.reshape(-1)
    shift2 = bn2b.reshape(-1)
    scale3 = bn3s.reshape(-1)
    shift3 = bn3b.reshape(-1)

    s1_rep = jnp.tile(scale1, K)                     # per-row (k*C_out + c) scale
    w_all = jnp.concatenate([wg * s1_rep[:, None], wr * scale3[:, None]], axis=0)
    b_all = jnp.concatenate([bg * s1_rep[:, None],
                             br * scale3[:, None] + shift3[:, None]], axis=0)
    wt_stack = (wt * scale2[None, :, None]).reshape(KT * C_out, C_out)
    bt_f = bt * scale2[:, None] + shift2[:, None]

    # ---- Fixed per-(T*V)-block graph operator: a_small[k] = kron(I_T, A[k]) -> (K,TV,TV).
    eye_t = jnp.eye(T, dtype=A.dtype)
    a_small = jnp.einsum('ij,kvw->kivjw', eye_t, A).reshape(K, TV, TV)

    # ---- Per-tap temporal shift + zero-pad as 0/1 (TV,TV) matrices: out = u @ S[dt].
    q = jnp.arange(TV)[:, None]                      # source lane within a TV block
    p = jnp.arange(TV)[None, :]                      # destination lane
    smats = []
    for dt in range(KT):
        d = dt - pad
        t_dst = p // V
        valid = (t_dst + d >= 0) & (t_dst + d < T)
        smats.append(jnp.where((q == p + d * V) & valid, 1.0, 0.0))
    smat = jnp.stack(smats)                          # (KT, TV, TV) f32

    # ---- Lane-dense activation layout: (C_in, N*T*V) with T*V on the lane axis.
    x_flat = jnp.transpose(x, (1, 0, 2, 3)).reshape(C_in, N * TV)

    n_rows = K * C_out + C_out
    kernel = functools.partial(_st_gcn_kernel, K, C_out, KT, pad, TV, b_blk,
                               compute_dtype)

    itemsize = jnp.dtype(compute_dtype).itemsize
    flops = steps * (2 * n_rows * C_in * L
                     + 2 * K * C_out * TV * TV * b_blk
                     + 2 * KT * C_out * C_out * L
                     + 2 * (KT - 1) * C_out * TV * TV * b_blk)
    bytes_accessed = (N * TV * (C_in * itemsize + C_out * 4)
                      + steps * ((K + KT) * TV * TV * itemsize
                                 + (n_rows * C_in + KT * C_out * C_out) * itemsize
                                 + (n_rows + 2 * C_out) * 4))

    out_flat = pl.pallas_call(
        kernel,
        out_shape=jax.ShapeDtypeStruct((C_out, N * TV), jnp.float32),
        grid=(steps,),
        in_specs=[
            pl.BlockSpec((C_in, L), lambda n: (0, n)),           # activations
            pl.BlockSpec((K, TV, TV), lambda n: (0, 0, 0)),      # kron(I_T, A[k])
            pl.BlockSpec((n_rows, C_in), lambda n: (0, 0)),      # stacked 1x1 weights
            pl.BlockSpec((n_rows, 1), lambda n: (0, 0)),         # stacked 1x1 biases
            pl.BlockSpec((C_out, 1), lambda n: (0, 0)),          # bn1 shift
            pl.BlockSpec((KT * C_out, C_out), lambda n: (0, 0)), # stacked temporal w
            pl.BlockSpec((C_out, 1), lambda n: (0, 0)),          # temporal bias (bn2 in)
            pl.BlockSpec((KT, TV, TV), lambda n: (0, 0, 0)),     # temporal shift mats
        ],
        out_specs=pl.BlockSpec((C_out, L), lambda n: (0, n)),
        scratch_shapes=[pltpu.VMEM((C_out, L), jnp.float32)],
        compiler_params=pltpu.CompilerParams(
            dimension_semantics=("parallel",),
            vmem_limit_bytes=32 * 1024 * 1024),
        cost_estimate=pl.CostEstimate(flops=int(flops), transcendentals=0,
                                      bytes_accessed=int(bytes_accessed)),
    )(x_flat.astype(compute_dtype), a_small.astype(compute_dtype),
      w_all.astype(compute_dtype), b_all.astype(jnp.float32),
      shift1.astype(jnp.float32), wt_stack.astype(compute_dtype),
      bt_f.astype(jnp.float32), smat.astype(compute_dtype))

    if lane_dense_out:
        return out_flat, A                         # (C_out, N*T*V): no HBM round trip
    out = out_flat.reshape(C_out, N, T, V).transpose(1, 0, 2, 3)
    return out, A


# ----------------------------------------------------------------------------
# Deterministic parameter construction (shapes follow the module __init__).
# ----------------------------------------------------------------------------
def init_params(key, C_in, C_out, K, KT, eps=1e-5):
    ks = jax.random.split(key, 20)
    nrm = lambda k, shape, s=0.1: s * jax.random.normal(k, shape, jnp.float32)

    def bn_fold(kg, kb, km, kv, shape_tail):
        g = 1.0 + nrm(kg, (C_out,))
        b = nrm(kb, (C_out,))
        m = nrm(km, (C_out,))
        v = 0.5 + jnp.abs(nrm(kv, (C_out,)))
        scale = g / jnp.sqrt(v + eps)
        shift = b - m * scale
        return scale.reshape((C_out,) + shape_tail), shift.reshape((C_out,) + shape_tail)

    # gcn 1x1 conv: Conv2d(C_in, C_out*K, kernel=(1,1))
    wg = nrm(ks[0], (K * C_out, C_in))
    bg = nrm(ks[1], (K * C_out, 1))
    # tcn: BN -> ReLU -> Conv2d(C_out, C_out, (KT,1), pad ((KT-1)//2,0)) -> BN
    bn1s, bn1b = bn_fold(ks[2], ks[3], ks[4], ks[5], (1, 1))
    wt = nrm(ks[6], (KT, C_out, C_out))        # wt[dt, c_out, c_in]
    bt = nrm(ks[7], (C_out, 1))
    bn2s, bn2b = bn_fold(ks[8], ks[9], ks[10], ks[11], (1,))
    # residual: Conv2d(C_in, C_out, 1) -> BN   (since C_in != C_out)
    wr = nrm(ks[12], (C_out, C_in))
    br = nrm(ks[13], (C_out, 1))
    bn3s, bn3b = bn_fold(ks[14], ks[15], ks[16], ks[17], (1,))
    return (wg, bg, bn1s, bn1b, wt, bt, bn2s, bn2b, wr, br, bn3s, bn3b)


# ----------------------------------------------------------------------------
# Pure-JAX reference (mirrors the PyTorch forward) for correctness checking.
# Einsums pinned to HIGHEST precision so the f32 comparison is well defined.
# ----------------------------------------------------------------------------
def ref_forward(x, A, params):
    P = jax.lax.Precision.HIGHEST
    (wg, bg, bn1s, bn1b, wt, bt, bn2s, bn2b, wr, br, bn3s, bn3b) = params
    N, C_in, T, V = x.shape
    K = A.shape[0]
    C_out = wr.shape[0]
    KT = wt.shape[0]
    pad = (KT - 1) // 2

    y = jnp.einsum('oc,nctv->notv', wg, x, precision=P) + bg.reshape(1, -1, 1, 1)
    y = y.reshape(N, K, C_out, T, V)
    s = jnp.einsum('nkctv,kvw->nctw', y, A, precision=P)
    h = s * bn1s.reshape(1, C_out, 1, 1) + bn1b.reshape(1, C_out, 1, 1)
    h = jnp.maximum(h, 0.0)
    hpad = jnp.pad(h, ((0, 0), (0, 0), (pad, pad), (0, 0)))
    tout = sum(jnp.einsum('oc,nctv->notv', wt[dt], hpad[:, :, dt:dt + T, :], precision=P)
               for dt in range(KT))
    tout = tout + bt.reshape(1, C_out, 1, 1)
    tout = tout * bn2s.reshape(1, C_out, 1, 1) + bn2b.reshape(1, C_out, 1, 1)
    res = jnp.einsum('oc,nctv->notv', wr, x, precision=P) + br.reshape(1, C_out, 1, 1)
    res = res * bn3s.reshape(1, C_out, 1, 1) + bn3b.reshape(1, C_out, 1, 1)
    return jnp.maximum(tout + res, 0.0), A


if __name__ == "__main__":
    # st_gcn(in_channels=4, out_channels=8, kernel_size=(3, 3), stride=1)
    N, C_in, C_out, T, V, K, KT = 8, 4, 8, 8, 16, 3, 3
    key = jax.random.PRNGKey(0)
    kx, ka, kp = jax.random.split(key, 3)
    x = jax.random.normal(kx, (N, C_in, T, V), jnp.float32)
    A = 0.2 * jax.random.normal(ka, (K, V, V), jnp.float32)
    params = init_params(kp, C_in, C_out, K, KT)

    ref, _ = ref_forward(x, A, params)

    # f32 operands (tight check).  b_blk auto-picks 4 -> L=512 lanes/step, grid=(2,).
    out, A_out = st_gcn_forward(x, A, params, compute_dtype=jnp.float32)
    out = jax.block_until_ready(out)
    err = float(jnp.max(jnp.abs(out - ref)))
    assert jnp.allclose(out, ref, atol=2e-3, rtol=2e-3), f"f32 max err {err}"

    # bf16 operands (MXU-native path; f32 accumulation), relaxed tolerance.
    out_bf, _ = st_gcn_forward(x, A, params, compute_dtype=jnp.bfloat16)
    out_bf = jax.block_until_ready(out_bf)
    err_bf = float(jnp.max(jnp.abs(out_bf - ref)))
    assert jnp.allclose(out_bf, ref, atol=5e-2, rtol=5e-2), f"bf16 max err {err_bf}"

    # TODO(synk): BatchNorm is eval-mode (running stats); training-mode batch
    # statistics and dropout>0 RNG are not modeled.
    print("KERNEL_OK")
</pallas_src>

<mosaic_0001>
module attributes {stable_mosaic.version = 11 : i64} {
  func.func @_st_gcn_kernel(%arg0: i32, %arg1: memref<4x512xf32, #tpu.memory_space<vmem>>, %arg2: memref<3x128x128xf32, #tpu.memory_space<vmem>>, %arg3: memref<32x4xf32, #tpu.memory_space<vmem>>, %arg4: memref<32x1xf32, #tpu.memory_space<vmem>>, %arg5: memref<8x1xf32, #tpu.memory_space<vmem>>, %arg6: memref<24x8xf32, #tpu.memory_space<vmem>>, %arg7: memref<8x1xf32, #tpu.memory_space<vmem>>, %arg8: memref<3x128x128xf32, #tpu.memory_space<vmem>>, %arg9: memref<8x512xf32, #tpu.memory_space<vmem>>, %arg10: memref<8x512xf32, #tpu.memory_space<vmem>>) attributes {dimension_semantics = [#tpu.dimension_semantics<parallel>], iteration_bounds = array<i64: 2>, scalar_prefetch = 0 : i64, scratch_operands = 1 : i64, tpu.core_type = #tpu.core_type<tc>, window_params = [{transform_indices = @transform_0, window_bounds = array<i64: 4, 512>}, {pipeline_mode = #tpu.pipeline_mode<synchronous>, transform_indices = @transform_1, window_bounds = array<i64: 3, 128, 128>}, {pipeline_mode = #tpu.pipeline_mode<synchronous>, transform_indices = @transform_2, window_bounds = array<i64: 32, 4>}, {pipeline_mode = #tpu.pipeline_mode<synchronous>, transform_indices = @transform_3, window_bounds = array<i64: 32, 1>}, {pipeline_mode = #tpu.pipeline_mode<synchronous>, transform_indices = @transform_4, window_bounds = array<i64: 8, 1>}, {pipeline_mode = #tpu.pipeline_mode<synchronous>, transform_indices = @transform_5, window_bounds = array<i64: 24, 8>}, {pipeline_mode = #tpu.pipeline_mode<synchronous>, transform_indices = @transform_6, window_bounds = array<i64: 8, 1>}, {pipeline_mode = #tpu.pipeline_mode<synchronous>, transform_indices = @transform_7, window_bounds = array<i64: 3, 128, 128>}, {transform_indices = @transform_8, window_bounds = array<i64: 8, 512>}]} {
    %c0 = arith.constant 0 : index
    %c0_0 = arith.constant 0 : index
    %0 = vector.load %arg1[%c0, %c0_0] : memref<4x512xf32, #tpu.memory_space<vmem>>, vector<4x512xf32>
    %c0_1 = arith.constant 0 : index
    %c0_2 = arith.constant 0 : index
    %1 = vector.load %arg3[%c0_1, %c0_2] : memref<32x4xf32, #tpu.memory_space<vmem>>, vector<32x4xf32>
    %cst = arith.constant dense<0.000000e+00> : vector<32x512xf32>
    %2 = tpu.matmul %1, %0, %cst {dimension_numbers = #tpu.dot_dimension_numbers<[1], [0], [0], [1], [0, 0, 1, 1], [], []>} : vector<32x4xf32>, vector<4x512xf32>, vector<32x512xf32> -> vector<32x512xf32>
    %c0_3 = arith.constant 0 : index
    %c0_4 = arith.constant 0 : index
    %3 = vector.load %arg4[%c0_3, %c0_4] : memref<32x1xf32, #tpu.memory_space<vmem>>, vector<32x1xf32>
    %4 = vector.broadcast %3 : vector<32x1xf32> to vector<32x512xf32>
    %5 = arith.addf %2, %4 : vector<32x512xf32>
    %6 = vector.extract_strided_slice %5 {offsets = [24, 0], sizes = [8, 512], strides = [1, 1]} : vector<32x512xf32> to vector<8x512xf32>
    %7 = vector.extract_strided_slice %5 {offsets = [0, 0], sizes = [8, 128], strides = [1, 1]} : vector<32x512xf32> to vector<8x128xf32>
    %c0_5 = arith.constant 0 : index
    %c0_6 = arith.constant 0 : index
    %c0_7 = arith.constant 0 : index
    %8 = vector.load %arg2[%c0_5, %c0_6, %c0_7] : memref<3x128x128xf32, #tpu.memory_space<vmem>>, vector<1x128x128xf32>
    %9 = vector.shape_cast %8 : vector<1x128x128xf32> to vector<128x128xf32>
    %cst_8 = arith.constant dense<0.000000e+00> : vector<8x128xf32>
    %10 = tpu.matmul %7, %9, %cst_8 {dimension_numbers = #tpu.dot_dimension_numbers<[1], [0], [0], [1], [0, 0, 1, 1], [], []>} : vector<8x128xf32>, vector<128x128xf32>, vector<8x128xf32> -> vector<8x128xf32>
    %11 = vector.extract_strided_slice %5 {offsets = [8, 0], sizes = [8, 128], strides = [1, 1]} : vector<32x512xf32> to vector<8x128xf32>
    %c1 = arith.constant 1 : index
    %c0_9 = arith.constant 0 : index
    %c0_10 = arith.constant 0 : index
    %12 = vector.load %arg2[%c1, %c0_9, %c0_10] : memref<3x128x128xf32, #tpu.memory_space<vmem>>, vector<1x128x128xf32>
    %13 = vector.shape_cast %12 : vector<1x128x128xf32> to vector<128x128xf32>
    %cst_11 = arith.constant dense<0.000000e+00> : vector<8x128xf32>
    %14 = tpu.matmul %11, %13, %cst_11 {dimension_numbers = #tpu.dot_dimension_numbers<[1], [0], [0], [1], [0, 0, 1, 1], [], []>} : vector<8x128xf32>, vector<128x128xf32>, vector<8x128xf32> -> vector<8x128xf32>
    %15 = arith.addf %10, %14 : vector<8x128xf32>
    %16 = vector.extract_strided_slice %5 {offsets = [16, 0], sizes = [8, 128], strides = [1, 1]} : vector<32x512xf32> to vector<8x128xf32>
    %c2 = arith.constant 2 : index
    %c0_12 = arith.constant 0 : index
    %c0_13 = arith.constant 0 : index
    %17 = vector.load %arg2[%c2, %c0_12, %c0_13] : memref<3x128x128xf32, #tpu.memory_space<vmem>>, vector<1x128x128xf32>
    %18 = vector.shape_cast %17 : vector<1x128x128xf32> to vector<128x128xf32>
    %cst_14 = arith.constant dense<0.000000e+00> : vector<8x128xf32>
    %19 = tpu.matmul %16, %18, %cst_14 {dimension_numbers = #tpu.dot_dimension_numbers<[1], [0], [0], [1], [0, 0, 1, 1], [], []>} : vector<8x128xf32>, vector<128x128xf32>, vector<8x128xf32> -> vector<8x128xf32>
    %20 = arith.addf %15, %19 : vector<8x128xf32>
    %c0_15 = arith.constant 0 : index
    %c0_16 = arith.constant 0 : index
    %21 = vector.load %arg10[%c0_15, %c0_16] : memref<8x512xf32, #tpu.memory_space<vmem>>, vector<8x128xf32>
    tpu.vector_store %arg10[%c0_15, %c0_16], %20 {strides = array<i32>} : memref<8x512xf32, #tpu.memory_space<vmem>>, vector<8x128xf32>,
    %22 = vector.extract_strided_slice %5 {offsets = [0, 128], sizes = [8, 128], strides = [1, 1]} : vector<32x512xf32> to vector<8x128xf32>
    %c0_17 = arith.constant 0 : index
    %c0_18 = arith.constant 0 : index
    %c0_19 = arith.constant 0 : index
    %23 = vector.load %arg2[%c0_17, %c0_18, %c0_19] : memref<3x128x128xf32, #tpu.memory_space<vmem>>, vector<1x128x128xf32>
    %24 = vector.shape_cast %23 : vector<1x128x128xf32> to vector<128x128xf32>
    %cst_20 = arith.constant dense<0.000000e+00> : vector<8x128xf32>
    %25 = tpu.matmul %22, %24, %cst_20 {dimension_numbers = #tpu.dot_dimension_numbers<[1], [0], [0], [1], [0, 0, 1, 1], [], []>} : vector<8x128xf32>, vector<128x128xf32>, vector<8x128xf32> -> vector<8x128xf32>
    %26 = vector.extract_strided_slice %5 {offsets = [8, 128], sizes = [8, 128], strides = [1, 1]} : vector<32x512xf32> to vector<8x128xf32>
    %c1_21 = arith.constant 1 : index
    %c0_22 = arith.constant 0 : index
    %c0_23 = arith.constant 0 : index
    %27 = vector.load %arg2[%c1_21, %c0_22, %c0_23] : memref<3x128x128xf32, #tpu.memory_space<vmem>>, vector<1x128x128xf32>
    %28 = vector.shape_cast %27 : vector<1x128x128xf32> to vector<128x128xf32>
    %cst_24 = arith.constant dense<0.000000e+00> : vector<8x128xf32>
    %29 = tpu.matmul %26, %28, %cst_24 {dimension_numbers = #tpu.dot_dimension_numbers<[1], [0], [0], [1], [0, 0, 1, 1], [], []>} : vector<8x128xf32>, vector<128x128xf32>, vector<8x128xf32> -> vector<8x128xf32>
    %30 = arith.addf %25, %29 : vector<8x128xf32>
    %31 = vector.extract_strided_slice %5 {offsets = [16, 128], sizes = [8, 128], strides = [1, 1]} : vector<32x512xf32> to vector<8x128xf32>
    %c2_25 = arith.constant 2 : index
    %c0_26 = arith.constant 0 : index
    %c0_27 = arith.constant 0 : index
    %32 = vector.load %arg2[%c2_25, %c0_26, %c0_27] : memref<3x128x128xf32, #tpu.memory_space<vmem>>, vector<1x128x128xf32>
    %33 = vector.shape_cast %32 : vector<1x128x128xf32> to vector<128x128xf32>
    %cst_28 = arith.constant dense<0.000000e+00> : vector<8x128xf32>
    %34 = tpu.matmul %31, %33, %cst_28 {dimension_numbers = #tpu.dot_dimension_numbers<[1], [0], [0], [1], [0, 0, 1, 1], [], []>} : vector<8x128xf32>, vector<128x128xf32>, vector<8x128xf32> -> vector<8x128xf32>
    %35 = arith.addf %30, %34 : vector<8x128xf32>
    %c0_29 = arith.constant 0 : index
    %c128 = arith.constant 128 : index
    %36 = vector.load %arg10[%c0_29, %c128] : memref<8x512xf32, #tpu.memory_space<vmem>>, vector<8x128xf32>
    tpu.vector_store %arg10[%c0_29, %c128], %35 {strides = array<i32>} : memref<8x512xf32, #tpu.memory_space<vmem>>, vector<8x128xf32>,
    %37 = vector.extract_strided_slice %5 {offsets = [0, 256], sizes = [8, 128], strides = [1, 1]} : vector<32x512xf32> to vector<8x128xf32>
    %c0_30 = arith.constant 0 : index
    %c0_31 = arith.constant 0 : index
    %c0_32 = arith.constant 0 : index
    %38 = vector.load %arg2[%c0_30, %c0_31, %c0_32] : memref<3x128x128xf32, #tpu.memory_space<vmem>>, vector<1x128x128xf32>
    %39 = vector.shape_cast %38 : vector<1x128x128xf32> to vector<128x128xf32>
    %cst_33 = arith.constant dense<0.000000e+00> : vector<8x128xf32>
    %40 = tpu.matmul %37, %39, %cst_33 {dimension_numbers = #tpu.dot_dimension_numbers<[1], [0], [0], [1], [0, 0, 1, 1], [], []>} : vector<8x128xf32>, vector<128x128xf32>, vector<8x128xf32> -> vector<8x128xf32>
    %41 = vector.extract_strided_slice %5 {offsets = [8, 256], sizes = [8, 128], strides = [1, 1]} : vector<32x512xf32> to vector<8x128xf32>
    %c1_34 = arith.constant 1 : index
    %c0_35 = arith.constant 0 : index
    %c0_36 = arith.constant 0 : index
    %42 = vector.load %arg2[%c1_34, %c0_35, %c0_36] : memref<3x128x128xf32, #tpu.memory_space<vmem>>, vector<1x128x128xf32>
    %43 = vector.shape_cast %42 : vector<1x128x128xf32> to vector<128x128xf32>
    %cst_37 = arith.constant dense<0.000000e+00> : vector<8x128xf32>
    %44 = tpu.matmul %41, %43, %cst_37 {dimension_numbers = #tpu.dot_dimension_numbers<[1], [0], [0], [1], [0, 0, 1, 1], [], []>} : vector<8x128xf32>, vector<128x128xf32>, vector<8x128xf32> -> vector<8x128xf32>
    %45 = arith.addf %40, %44 : vector<8x128xf32>
    %46 = vector.extract_strided_slice %5 {offsets = [16, 256], sizes = [8, 128], strides = [1, 1]} : vector<32x512xf32> to vector<8x128xf32>
    %c2_38 = arith.constant 2 : index
    %c0_39 = arith.constant 0 : index
    %c0_40 = arith.constant 0 : index
    %47 = vector.load %arg2[%c2_38, %c0_39, %c0_40] : memref<3x128x128xf32, #tpu.memory_space<vmem>>, vector<1x128x128xf32>
    %48 = vector.shape_cast %47 : vector<1x128x128xf32> to vector<128x128xf32>
    %cst_41 = arith.constant dense<0.000000e+00> : vector<8x128xf32>
    %49 = tpu.matmul %46, %48, %cst_41 {dimension_numbers = #tpu.dot_dimension_numbers<[1], [0], [0], [1], [0, 0, 1, 1], [], []>} : vector<8x128xf32>, vector<128x128xf32>, vector<8x128xf32> -> vector<8x128xf32>
    %50 = arith.addf %45, %49 : vector<8x128xf32>
    %c0_42 = arith.constant 0 : index
    %c256 = arith.constant 256 : index
    %51 = vector.load %arg10[%c0_42, %c256] : memref<8x512xf32, #tpu.memory_space<vmem>>, vector<8x128xf32>
    tpu.vector_store %arg10[%c0_42, %c256], %50 {strides = array<i32>} : memref<8x512xf32, #tpu.memory_space<vmem>>, vector<8x128xf32>,
    %52 = vector.extract_strided_slice %5 {offsets = [0, 384], sizes = [8, 128], strides = [1, 1]} : vector<32x512xf32> to vector<8x128xf32>
    %c0_43 = arith.constant 0 : index
    %c0_44 = arith.constant 0 : index
    %c0_45 = arith.constant 0 : index
    %53 = vector.load %arg2[%c0_43, %c0_44, %c0_45] : memref<3x128x128xf32, #tpu.memory_space<vmem>>, vector<1x128x128xf32>
    %54 = vector.shape_cast %53 : vector<1x128x128xf32> to vector<128x128xf32>
    %cst_46 = arith.constant dense<0.000000e+00> : vector<8x128xf32>
    %55 = tpu.matmul %52, %54, %cst_46 {dimension_numbers = #tpu.dot_dimension_numbers<[1], [0], [0], [1], [0, 0, 1, 1], [], []>} : vector<8x128xf32>, vector<128x128xf32>, vector<8x128xf32> -> vector<8x128xf32>
    %56 = vector.extract_strided_slice %5 {offsets = [8, 384], sizes = [8, 128], strides = [1, 1]} : vector<32x512xf32> to vector<8x128xf32>
    %c1_47 = arith.constant 1 : index
    %c0_48 = arith.constant 0 : index
    %c0_49 = arith.constant 0 : index
    %57 = vector.load %arg2[%c1_47, %c0_48, %c0_49] : memref<3x128x128xf32, #tpu.memory_space<vmem>>, vector<1x128x128xf32>
    %58 = vector.shape_cast %57 : vector<1x128x128xf32> to vector<128x128xf32>
    %cst_50 = arith.constant dense<0.000000e+00> : vector<8x128xf32>
    %59 = tpu.matmul %56, %58, %cst_50 {dimension_numbers = #tpu.dot_dimension_numbers<[1], [0], [0], [1], [0, 0, 1, 1], [], []>} : vector<8x128xf32>, vector<128x128xf32>, vector<8x128xf32> -> vector<8x128xf32>
    %60 = arith.addf %55, %59 : vector<8x128xf32>
    %61 = vector.extract_strided_slice %5 {offsets = [16, 384], sizes = [8, 128], strides = [1, 1]} : vector<32x512xf32> to vector<8x128xf32>
    %c2_51 = arith.constant 2 : index
    %c0_52 = arith.constant 0 : index
    %c0_53 = arith.constant 0 : index
    %62 = vector.load %arg2[%c2_51, %c0_52, %c0_53] : memref<3x128x128xf32, #tpu.memory_space<vmem>>, vector<1x128x128xf32>
    %63 = vector.shape_cast %62 : vector<1x128x128xf32> to vector<128x128xf32>
    %cst_54 = arith.constant dense<0.000000e+00> : vector<8x128xf32>
    %64 = tpu.matmul %61, %63, %cst_54 {dimension_numbers = #tpu.dot_dimension_numbers<[1], [0], [0], [1], [0, 0, 1, 1], [], []>} : vector<8x128xf32>, vector<128x128xf32>, vector<8x128xf32> -> vector<8x128xf32>
    %65 = arith.addf %60, %64 : vector<8x128xf32>
    %c0_55 = arith.constant 0 : index
    %c384 = arith.constant 384 : index
    %66 = vector.load %arg10[%c0_55, %c384] : memref<8x512xf32, #tpu.memory_space<vmem>>, vector<8x128xf32>
    tpu.vector_store %arg10[%c0_55, %c384], %65 {strides = array<i32>} : memref<8x512xf32, #tpu.memory_space<vmem>>, vector<8x128xf32>,
    %c0_56 = arith.constant 0 : index
    %c0_57 = arith.constant 0 : index
    %67 = vector.load %arg10[%c0_56, %c0_57] : memref<8x512xf32, #tpu.memory_space<vmem>>, vector<8x512xf32>
    %c0_58 = arith.constant 0 : index
    %c0_59 = arith.constant 0 : index
    %68 = vector.load %arg5[%c0_58, %c0_59] : memref<8x1xf32, #tpu.memory_space<vmem>>, vector<8x1xf32>
    %69 = vector.broadcast %68 : vector<8x1xf32> to vector<8x512xf32>
    %70 = arith.addf %67, %69 : vector<8x512xf32>
    %cst_60 = arith.constant 0.000000e+00 : f32
    %71 = vector.broadcast %cst_60 : f32 to vector<8x512xf32>
    %72 = arith.maximumf %70, %71 : vector<8x512xf32>
    %c0_61 = arith.constant 0 : index
    %c0_62 = arith.constant 0 : index
    %73 = vector.load %arg6[%c0_61, %c0_62] : memref<24x8xf32, #tpu.memory_space<vmem>>, vector<24x8xf32>
    %cst_63 = arith.constant dense<0.000000e+00> : vector<24x512xf32>
    %74 = tpu.matmul %73, %72, %cst_63 {dimension_numbers = #tpu.dot_dimension_numbers<[1], [0], [0], [1], [0, 0, 1, 1], [], []>} : vector<24x8xf32>, vector<8x512xf32>, vector<24x512xf32> -> vector<24x512xf32>
    %c0_64 = arith.constant 0 : index
    %c0_65 = arith.constant 0 : index
    %75 = vector.load %arg7[%c0_64, %c0_65] : memref<8x1xf32, #tpu.memory_space<vmem>>, vector<8x1xf32>
    %76 = vector.extract_strided_slice %74 {offsets = [8, 0], sizes = [8, 128], strides = [1, 1]} : vector<24x512xf32> to vector<8x128xf32>
    %77 = vector.extract_strided_slice %74 {offsets = [0, 0], sizes = [8, 128], strides = [1, 1]} : vector<24x512xf32> to vector<8x128xf32>
    %c0_66 = arith.constant 0 : index
    %c0_67 = arith.constant 0 : index
    %c0_68 = arith.constant 0 : index
    %78 = vector.load %arg8[%c0_66, %c0_67, %c0_68] : memref<3x128x128xf32, #tpu.memory_space<vmem>>, vector<1x128x128xf32>
    %79 = vector.shape_cast %78 : vector<1x128x128xf32> to vector<128x128xf32>
    %cst_69 = arith.constant dense<0.000000e+00> : vector<8x128xf32>
    %80 = tpu.matmul %77, %79, %cst_69 {dimension_numbers = #tpu.dot_dimension_numbers<[1], [0], [0], [1], [0, 0, 1, 1], [], []>} : vector<8x128xf32>, vector<128x128xf32>, vector<8x128xf32> -> vector<8x128xf32>
    %81 = arith.addf %76, %80 : vector<8x128xf32>
    %82 = vector.extract_strided_slice %74 {offsets = [16, 0], sizes = [8, 128], strides = [1, 1]} : vector<24x512xf32> to vector<8x128xf32>
    %c2_70 = arith.constant 2 : index
    %c0_71 = arith.constant 0 : index
    %c0_72 = arith.constant 0 : index
    %83 = vector.load %arg8[%c2_70, %c0_71, %c0_72] : memref<3x128x128xf32, #tpu.memory_space<vmem>>, vector<1x128x128xf32>
    %84 = vector.shape_cast %83 : vector<1x128x128xf32> to vector<128x128xf32>
    %cst_73 = arith.constant dense<0.000000e+00> : vector<8x128xf32>
    %85 = tpu.matmul %82, %84, %cst_73 {dimension_numbers = #tpu.dot_dimension_numbers<[1], [0], [0], [1], [0, 0, 1, 1], [], []>} : vector<8x128xf32>, vector<128x128xf32>, vector<8x128xf32> -> vector<8x128xf32>
    %86 = arith.addf %81, %85 : vector<8x128xf32>
    %87 = vector.broadcast %75 : vector<8x1xf32> to vector<8x128xf32>
    %88 = arith.addf %86, %87 : vector<8x128xf32>
    %89 = vector.extract_strided_slice %6 {offsets = [0, 0], sizes = [8, 128], strides = [1, 1]} : vector<8x512xf32> to vector<8x128xf32>
    %90 = arith.addf %88, %89 : vector<8x128xf32>
    %cst_74 = arith.constant 0.000000e+00 : f32
    %91 = vector.broadcast %cst_74 : f32 to vector<8x128xf32>
    %92 = arith.maximumf %90, %91 : vector<8x128xf32>
    %c0_75 = arith.constant 0 : index
    %c0_76 = arith.constant 0 : index
    %93 = vector.load %arg9[%c0_75, %c0_76] : memref<8x512xf32, #tpu.memory_space<vmem>>, vector<8x128xf32>
    tpu.vector_store %arg9[%c0_75, %c0_76], %92 {strides = array<i32>} : memref<8x512xf32, #tpu.memory_space<vmem>>, vector<8x128xf32>,
    %94 = vector.extract_strided_slice %74 {offsets = [8, 128], sizes = [8, 128], strides = [1, 1]} : vector<24x512xf32> to vector<8x128xf32>
    %95 = vector.extract_strided_slice %74 {offsets = [0, 128], sizes = [8, 128], strides = [1, 1]} : vector<24x512xf32> to vector<8x128xf32>
    %c0_77 = arith.constant 0 : index
    %c0_78 = arith.constant 0 : index
    %c0_79 = arith.constant 0 : index
    %96 = vector.load %arg8[%c0_77, %c0_78, %c0_79] : memref<3x128x128xf32, #tpu.memory_space<vmem>>, vector<1x128x128xf32>
    %97 = vector.shape_cast %96 : vector<1x128x128xf32> to vector<128x128xf32>
    %cst_80 = arith.constant dense<0.000000e+00> : vector<8x128xf32>
    %98 = tpu.matmul %95, %97, %cst_80 {dimension_numbers = #tpu.dot_dimension_numbers<[1], [0], [0], [1], [0, 0, 1, 1], [], []>} : vector<8x128xf32>, vector<128x128xf32>, vector<8x128xf32> -> vector<8x128xf32>
    %99 = arith.addf %94, %98 : vector<8x128xf32>
    %100 = vector.extract_strided_slice %74 {offsets = [16, 128], sizes = [8, 128], strides = [1, 1]} : vector<24x512xf32> to vector<8x128xf32>
    %c2_81 = arith.constant 2 : index
    %c0_82 = arith.constant 0 : index
    %c0_83 = arith.constant 0 : index
    %101 = vector.load %arg8[%c2_81, %c0_82, %c0_83] : memref<3x128x128xf32, #tpu.memory_space<vmem>>, vector<1x128x128xf32>
    %102 = vector.shape_cast %101 : vector<1x128x128xf32> to vector<128x128xf32>
    %cst_84 = arith.constant dense<0.000000e+00> : vector<8x128xf32>
    %103 = tpu.matmul %100, %102, %cst_84 {dimension_numbers = #tpu.dot_dimension_numbers<[1], [0], [0], [1], [0, 0, 1, 1], [], []>} : vector<8x128xf32>, vector<128x128xf32>, vector<8x128xf32> -> vector<8x128xf32>
    %104 = arith.addf %99, %103 : vector<8x128xf32>
    %105 = vector.broadcast %75 : vector<8x1xf32> to vector<8x128xf32>
    %106 = arith.addf %104, %105 : vector<8x128xf32>
    %107 = vector.extract_strided_slice %6 {offsets = [0, 128], sizes = [8, 128], strides = [1, 1]} : vector<8x512xf32> to vector<8x128xf32>
    %108 = arith.addf %106, %107 : vector<8x128xf32>
    %cst_85 = arith.constant 0.000000e+00 : f32
    %109 = vector.broadcast %cst_85 : f32 to vector<8x128xf32>
    %110 = arith.maximumf %108, %109 : vector<8x128xf32>
    %c0_86 = arith.constant 0 : index
    %c128_87 = arith.constant 128 : index
    %111 = vector.load %arg9[%c0_86, %c128_87] : memref<8x512xf32, #tpu.memory_space<vmem>>, vector<8x128xf32>
    tpu.vector_store %arg9[%c0_86, %c128_87], %110 {strides = array<i32>} : memref<8x512xf32, #tpu.memory_space<vmem>>, vector<8x128xf32>,
    %112 = vector.extract_strided_slice %74 {offsets = [8, 256], sizes = [8, 128], strides = [1, 1]} : vector<24x512xf32> to vector<8x128xf32>
    %113 = vector.extract_strided_slice %74 {offsets = [0, 256], sizes = [8, 128], strides = [1, 1]} : vector<24x512xf32> to vector<8x128xf32>
    %c0_88 = arith.constant 0 : index
    %c0_89 = arith.constant 0 : index
    %c0_90 = arith.constant 0 : index
    %114 = vector.load %arg8[%c0_88, %c0_89, %c0_90] : memref<3x128x128xf32, #tpu.memory_space<vmem>>, vector<1x128x128xf32>
    %115 = vector.shape_cast %114 : vector<1x128x128xf32> to vector<128x128xf32>
    %cst_91 = arith.constant dense<0.000000e+00> : vector<8x128xf32>
    %116 = tpu.matmul %113, %115, %cst_91 {dimension_numbers = #tpu.dot_dimension_numbers<[1], [0], [0], [1], [0, 0, 1, 1], [], []>} : vector<8x128xf32>, vector<128x128xf32>, vector<8x128xf32> -> vector<8x128xf32>
    %117 = arith.addf %112, %116 : vector<8x128xf32>
    %118 = vector.extract_strided_slice %74 {offsets = [16, 256], sizes = [8, 128], strides = [1, 1]} : vector<24x512xf32> to vector<8x128xf32>
    %c2_92 = arith.constant 2 : index
    %c0_93 = arith.constant 0 : index
    %c0_94 = arith.constant 0 : index
    %119 = vector.load %arg8[%c2_92, %c0_93, %c0_94] : memref<3x128x128xf32, #tpu.memory_space<vmem>>, vector<1x128x128xf32>
    %120 = vector.shape_cast %119 : vector<1x128x128xf32> to vector<128x128xf32>
    %cst_95 = arith.constant dense<0.000000e+00> : vector<8x128xf32>
    %121 = tpu.matmul %118, %120, %cst_95 {dimension_numbers = #tpu.dot_dimension_numbers<[1], [0], [0], [1], [0, 0, 1, 1], [], []>} : vector<8x128xf32>, vector<128x128xf32>, vector<8x128xf32> -> vector<8x128xf32>
    %122 = arith.addf %117, %121 : vector<8x128xf32>
    %123 = vector.broadcast %75 : vector<8x1xf32> to vector<8x128xf32>
    %124 = arith.addf %122, %123 : vector<8x128xf32>
    %125 = vector.extract_strided_slice %6 {offsets = [0, 256], sizes = [8, 128], strides = [1, 1]} : vector<8x512xf32> to vector<8x128xf32>
    %126 = arith.addf %124, %125 : vector<8x128xf32>
    %cst_96 = arith.constant 0.000000e+00 : f32
    %127 = vector.broadcast %cst_96 : f32 to vector<8x128xf32>
    %128 = arith.maximumf %126, %127 : vector<8x128xf32>
    %c0_97 = arith.constant 0 : index
    %c256_98 = arith.constant 256 : index
    %129 = vector.load %arg9[%c0_97, %c256_98] : memref<8x512xf32, #tpu.memory_space<vmem>>, vector<8x128xf32>
    tpu.vector_store %arg9[%c0_97, %c256_98], %128 {strides = array<i32>} : memref<8x512xf32, #tpu.memory_space<vmem>>, vector<8x128xf32>,
    %130 = vector.extract_strided_slice %74 {offsets = [8, 384], sizes = [8, 128], strides = [1, 1]} : vector<24x512xf32> to vector<8x128xf32>
    %131 = vector.extract_strided_slice %74 {offsets = [0, 384], sizes = [8, 128], strides = [1, 1]} : vector<24x512xf32> to vector<8x128xf32>
    %c0_99 = arith.constant 0 : index
    %c0_100 = arith.constant 0 : index
    %c0_101 = arith.constant 0 : index
    %132 = vector.load %arg8[%c0_99, %c0_100, %c0_101] : memref<3x128x128xf32, #tpu.memory_space<vmem>>, vector<1x128x128xf32>
    %133 = vector.shape_cast %132 : vector<1x128x128xf32> to vector<128x128xf32>
    %cst_102 = arith.constant dense<0.000000e+00> : vector<8x128xf32>
    %134 = tpu.matmul %131, %133, %cst_102 {dimension_numbers = #tpu.dot_dimension_numbers<[1], [0], [0], [1], [0, 0, 1, 1], [], []>} : vector<8x128xf32>, vector<128x128xf32>, vector<8x128xf32> -> vector<8x128xf32>
    %135 = arith.addf %130, %134 : vector<8x128xf32>
    %136 = vector.extract_strided_slice %74 {offsets = [16, 384], sizes = [8, 128], strides = [1, 1]} : vector<24x512xf32> to vector<8x128xf32>
    %c2_103 = arith.constant 2 : index
    %c0_104 = arith.constant 0 : index
    %c0_105 = arith.constant 0 : index
    %137 = vector.load %arg8[%c2_103, %c0_104, %c0_105] : memref<3x128x128xf32, #tpu.memory_space<vmem>>, vector<1x128x128xf32>
    %138 = vector.shape_cast %137 : vector<1x128x128xf32> to vector<128x128xf32>
    %cst_106 = arith.constant dense<0.000000e+00> : vector<8x128xf32>
    %139 = tpu.matmul %136, %138, %cst_106 {dimension_numbers = #tpu.dot_dimension_numbers<[1], [0], [0], [1], [0, 0, 1, 1], [], []>} : vector<8x128xf32>, vector<128x128xf32>, vector<8x128xf32> -> vector<8x128xf32>
    %140 = arith.addf %135, %139 : vector<8x128xf32>
    %141 = vector.broadcast %75 : vector<8x1xf32> to vector<8x128xf32>
    %142 = arith.addf %140, %141 : vector<8x128xf32>
    %143 = vector.extract_strided_slice %6 {offsets = [0, 384], sizes = [8, 128], strides = [1, 1]} : vector<8x512xf32> to vector<8x128xf32>
    %144 = arith.addf %142, %143 : vector<8x128xf32>
    %cst_107 = arith.constant 0.000000e+00 : f32
    %145 = vector.broadcast %cst_107 : f32 to vector<8x128xf32>
    %146 = arith.maximumf %144, %145 : vector<8x128xf32>
    %c0_108 = arith.constant 0 : index
    %c384_109 = arith.constant 384 : index
    %147 = vector.load %arg9[%c0_108, %c384_109] : memref<8x512xf32, #tpu.memory_space<vmem>>, vector<8x128xf32>
    tpu.vector_store %arg9[%c0_108, %c384_109], %146 {strides = array<i32>} : memref<8x512xf32, #tpu.memory_space<vmem>>, vector<8x128xf32>,
    return
  }
  func.func @transform_0(%arg0: i32) -> (i32, i32) {
    %c0_i32 = arith.constant 0 : i32
    %c0_i32_0 = arith.constant 0 : i32
    return %c0_i32, %arg0 : i32, i32
  }
  func.func @transform_1(%arg0: i32) -> (i32, i32, i32) {
    %c0_i32 = arith.constant 0 : i32
    %c0_i32_0 = arith.constant 0 : i32
    %c0_i32_1 = arith.constant 0 : i32
    %c0_i32_2 = arith.constant 0 : i32
    return %c0_i32, %c0_i32_0, %c0_i32_1 : i32, i32, i32
  }
  func.func @transform_2(%arg0: i32) -> (i32, i32) {
    %c0_i32 = arith.constant 0 : i32
    %c0_i32_0 = arith.constant 0 : i32
    %c0_i32_1 = arith.constant 0 : i32
    return %c0_i32, %c0_i32_0 : i32, i32
  }
  func.func @transform_3(%arg0: i32) -> (i32, i32) {
    %c0_i32 = arith.constant 0 : i32
    %c0_i32_0 = arith.constant 0 : i32
    %c0_i32_1 = arith.constant 0 : i32
    return %c0_i32, %c0_i32_0 : i32, i32
  }
  func.func @transform_4(%arg0: i32) -> (i32, i32) {
    %c0_i32 = arith.constant 0 : i32
    %c0_i32_0 = arith.constant 0 : i32
    %c0_i32_1 = arith.constant 0 : i32
    return %c0_i32, %c0_i32_0 : i32, i32
  }
  func.func @transform_5(%arg0: i32) -> (i32, i32) {
    %c0_i32 = arith.constant 0 : i32
    %c0_i32_0 = arith.constant 0 : i32
    %c0_i32_1 = arith.constant 0 : i32
    return %c0_i32, %c0_i32_0 : i32, i32
  }
  func.func @transform_6(%arg0: i32) -> (i32, i32) {
    %c0_i32 = arith.constant 0 : i32
    %c0_i32_0 = arith.constant 0 : i32
    %c0_i32_1 = arith.constant 0 : i32
    return %c0_i32, %c0_i32_0 : i32, i32
  }
  func.func @transform_7(%arg0: i32) -> (i32, i32, i32) {
    %c0_i32 = arith.constant 0 : i32
    %c0_i32_0 = arith.constant 0 : i32
    %c0_i32_1 = arith.constant 0 : i32
    %c0_i32_2 = arith.constant 0 : i32
    return %c0_i32, %c0_i32_0, %c0_i32_1 : i32, i32, i32
  }
  func.func @transform_8(%arg0: i32) -> (i32, i32) {
    %c0_i32 = arith.constant 0 : i32
    %c0_i32_0 = arith.constant 0 : i32
    return %c0_i32, %arg0 : i32, i32
  }
}

</mosaic_0001>

<bundles_post_ra>
// kernel: tpu_custom_call.1
= control target key start
LH: loop header
LB: loop body
LE: loop exit
PB: predicated region body
PF: predicated region fallthrough
CT: control target
= control target key end

     0   :  { %13 = vsyncpa [#allocation4], 0  ;;  %s5214_s0 = inlined_call_operand.vmem [shape: f32[4,1024], index: 0, kind: input, shape index: {}]   ;;  %s5215_s1 = inlined_call_operand.hbm [shape: f32[3,128,128], index: 1, kind: input, shape index: {}]   ;;  %s5216_s2 = inlined_call_operand.vmem [shape: f32[32,4], index: 2, kind: input, shape index: {}]   ;;  %s5217_s3 = inlined_call_operand.vmem [shape: f32[32,1], index: 3, kind: input, shape index: {}]   ;;  %s5218_s4 = inlined_call_operand.vmem [shape: f32[8,1], index: 4, kind: input, shape index: {}]   ;;  %s5219_s5 = inlined_call_operand.vmem [shape: f32[24,8], index: 5, kind: input, shape index: {}]   ;;  %s5220_s6 = inlined_call_operand.vmem [shape: f32[8,1], index: 6, kind: input, shape index: {}]   ;;  %s5221_s7 = inlined_call_operand.hbm [shape: f32[3,128,128], index: 7, kind: input, shape index: {}]   ;;  %s5222_s8 = inlined_call_operand.hbm [shape: f32[8,1024], index: 8, kind: output, shape index: {}]  }
   0x1   :  { %14 = vsyncpa [#allocation7], 0 }
   0x2   :  { %15 = vsyncpa [#allocation5], 0 }
   0x3   :  { %17 = vsyncpa [#allocation5 + $0x1], 0  ;;  %s4432_s27 = smov 0   ;;  %s4434_s28 = smov 0  }
   0x4   :  { %s4436_s29 = smov 0   ;;  %s4438_s30 = smov 0  }
   0x5 LB: > { %5227 = sst [smem:[#allocation12_spill]] %s4372_s29  ;;  %s4453_s9 = sadd.s32 4294967295, %s4376_s30   ;;  %s4376_s30 = sphi %s4438_s30, %s5244_s30   ;;  %s4372_s29 = sphi %s4436_s29, %s5241_s29   ;;  %s4368_s28 = sphi %s4434_s28, %s5243_s28   ;;  %s4364_s27 = sphi %s4432_s27, %s5242_s27  }
   0x6   : > { %s2625_s10 = sadd.s32 4294967294, %s4376_s30   ;;  %s4457_s11 = sadd.s32 1, %s4376_s30  }
   0x7   : > { %s203_s12 = sadd.s32 1, %s4372_s29  ;;  %s200_s13 = ssub.s32 %s4376_s30, %s4457_s11 }
   0x8   : > { %p213_p0 = scmp.ne.s32.totalorder %s4372_s29, %s4368_s28  ;;  %p201_p1 = scmp.eq.s32.totalorder %s200_s13, 0 }
   0x9   : > { %p214_p2 = scmp.eq.s32.totalorder %s4453_s9, 1  ;;  %p219_p3 = scmp.ne.s32.totalorder %s4368_s28, %s4364_s27 }
   0xa   : > { %p220_p4 = scmp.eq.s32.totalorder %s2625_s10, 1  ;;  %p2626_p7 = scmp.ge.s32.totalorder %s4376_s30, 1 }
   0xb   : > { %s4468_s14 = scalar_select %p201_p1, %s4372_s29, %s203_s12  }
   0xc   : > { %p4470_p5 = por %p214_p2, %p213_p0  ;;  %p4474_p6 = por %p220_p4, %p219_p3 }
   0xd   : > { %5228 = sst [smem:[#allocation13_spill]] %s4468_s14  ;;  %p227_p8 = scmp.lt.s32.totalorder %s4376_s30, 3 }
   0xe   : > { %s5229_s15 = scalar_select %p4470_p5, 1, 0 }
   0xf   : > { %s5230_s16 = scalar_select %p4474_p6, 1, 0 }
  0x10   : > { %p5223_p9 = scmp.eq.s32.totalorder %s4453_s9, 0  ;;  %p4481_p10 = pnand %p2626_p7, %p227_p8 }
  0x11   : > { %s4378_s18 = smov [#allocation3]   ;;  %s4379_s21 = smov [#allocation6]  }
  0x12   : > { %s5231_s17 = scalar_select %p4481_p10, 1, 0 }
  0x13   : > { %s239_s19 = sshll.u32 %s4378_s18, 4  ;;  %p4190_p11 = pneg %p4481_p10  ;;  %s240_s19 = int_to_ptr.vmem [resolvable:$true] %s239_s19 }
  0x14   : > { %s267_s22 = sshll.u32 %s4379_s21, 4  ;;  %s4250_s25 = scalar_lea.hbm %s5215_s1, 6144  ;;  %s4493_s22 = int_to_ptr.vmem [resolvable:$true] %s267_s22 }
  0x15   : > { %p4489_p12 = pnand %p5223_p9, %p4190_p11  ;;  %p4251_p13 = scmp.ne.s32.totalorder %s5215_s1, %s4250_s25 }
  0x16   : > { %p4257_p3 = scmp.lt.u32.totalorder %s4250_s25, %s5215_s1 }
  0x17   : > { %p4252_p0 = pneg %p4489_p12 }
  0x19   : > { %p4253_p1 = pnand %p4252_p0, %p4251_p13 }
  0x1b   : > { %p4254_p2 = pneg %p4253_p1 }
  0x1d   : > { %p4259_p4 = pnand %p4257_p3, %p4254_p2 }
  0x1f   : > { %4262 = shalt.err (!%p4259_p4)
}
  0x20   : > { %s4263_s18 = scalar_lea.vmem %s240_s19, 6144  ;;  %p4271_p9 = scmp.lt.s32.totalorder %s240_s19, %s240_s19 }
  0x21   : > { %p4264_p7 = scmp.ne.s32.totalorder %s240_s19, %s4263_s18  ;;  %p4272_p6 = scmp.lt.s32.totalorder %s4263_s18, %s4263_s18 }
  0x23   : > { %p4266_p8 = pnand %p4264_p7, %p4252_p0  ;;  %p4273_p5 = por %p4272_p6, %p4271_p9 }
  0x25   : > { %p4267_p11 = pneg %p4266_p8 }
  0x27   : > { %p4274_p10 = pnand %p4273_p5, %p4267_p11 }
  0x29   : > { %4277 = shalt.err (!%p4274_p10)
}
  0x2a   : > { %s4380_s21 = smov 128   ;;  %s4381_s23 = smov 8  }
  0x2b   : > { %4193 = dma.hbm_to_vmem [thread:$0]  (!%p4489_p12), %s5215_s1, 6144, %s240_s19, [#allocation4], %s4380_s21, %s4380_s21, %s4381_s23  }
  0x2c   : > { %s4278_s12 = scalar_lea.hbm %s5221_s7, 6144 }
  0x2d   : > { %p4279_p13 = scmp.ne.s32.totalorder %s5221_s7, %s4278_s12  ;;  %p4285_p9 = scmp.lt.u32.totalorder %s4278_s12, %s5221_s7 }
  0x2f   : > { %p4281_p5 = pnand %p4279_p13, %p4252_p0 }
  0x31   : > { %p4282_p6 = pneg %p4281_p5 }
  0x33   : > { %p4287_p10 = pnand %p4285_p9, %p4282_p6 }
  0x35   : > { %4290 = shalt.err (!%p4287_p10)
}
  0x36   : > { %s4291_s19 = scalar_lea.vmem %s4493_s22, 6144  ;;  %p4299_p4 = scmp.lt.s32.totalorder %s4493_s22, %s4493_s22 }
  0x37   : > { %p4292_p1 = scmp.ne.s32.totalorder %s4493_s22, %s4291_s19  ;;  %p4300_p7 = scmp.lt.s32.totalorder %s4291_s19, %s4291_s19 }
  0x39   : > { %p4294_p2 = pnand %p4292_p1, %p4252_p0  ;;  %p4301_p8 = por %p4300_p7, %p4299_p4 }
  0x3b   : > { %p4295_p3 = pneg %p4294_p2 }
  0x3d   : > { %p4302_p11 = pnand %p4301_p8, %p4295_p3 }
  0x3f   : > { %4305 = shalt.err (!%p4302_p11)
}
  0x40   : > { %4196 = dma.hbm_to_vmem [thread:$0]  (!%p4489_p12), %s5221_s7, 6144, %s4493_s22, [#allocation7], %s4380_s21, %s4380_s21, %s4381_s23  }
  0x41   : > { %p5233_p13 = scmp.ne.s32.totalorder %s5231_s17, 0 }
  0x42   : > { %p5234_p5 = scmp.eq.s32.totalorder (!%p5233_p13), %s4453_s9, 0 }
  0x43   : > { %292 = sbr.rel (%p5233_p13) target bundleno = 1176 (0x498), region = 52 }
  0x4a   : > { %4351 = dma.done.wait (%p5234_p5), [#allocation4], 6144   ;;  %p5235_p0 = pmov %p5234_p5 }
  0x4c   : > { %4353 = vsyncadd (%p5235_p0), [#allocation4], 4294961152  ;;  %p5236_p6 = pmov %p5235_p0 }
  0x4d   : > { %p5237_p9 = pmov %p5235_p0 }
  0x4e   : > { %4355 = dma.done.wait (%p5236_p6), [#allocation7], 6144  }
  0x4f   : > { %4357 = vsyncadd (%p5237_p9), [#allocation7], 4294961152  ;;  %s2634_s20 = sshll.u32 %s4453_s9, 2  ;;  %v4382_v0 = vmov 0.0   ;;  %v4383_v1 = vmov 0   ;;  %vm384_vm0 = vcmask 1043456  }
  0x50   : > { %p331_p10 = scmp.lt.s32.totalorder %s2634_s20, 7  ;;  %457 = vmatprep.mubr.f32.mxu0 %v4382_v0  ;;  %546 = vmatprep.mubr.f32.mxu1 %v4382_v0  ;;  %v339_v6 = vld [vmem:[%s5216_s2] sm:$0xff]  ;;  %vm371_vm1 = vcmask 31744   ;;  %v344_v7 = vld [vmem:[%s5217_s3 + $0x8] sm:$0xff]  ;;  %v345_v8 = vld [vmem:[%s5217_s3 + $0x10] sm:$0xff]  ;;  %v4384_v16 = vmov 0.0|0.0  }
  0x51   : > { %4246 = vset.pattern.permute.xlu0 %v4383_v1  ;;  %4247 = vset.pattern.permute.xlu1 %v4383_v1  ;;  %v571_v9 = vld [vmem:[#allocation3] sm:$0xff]  ;;  %v572_v10 = vld [vmem:[#allocation3 + $0x8] sm:$0xff]  ;;  %v341_v19 = vld [vmem:[%s5216_s2 + $0x10] sm:$0xff]  ;;  %vm4385_vm2 = vmmov 0   ;;  %vm1634_vm3 = vcmask 64512   ;;  %p5238_p1 = scmp.ne.s32.totalorder %s5229_s15, 0 }
  0x52   : > { %s5246_s20 = smov (!%p331_p10, %s2634_s20), 7  ;;  %v588_v11 = vld [vmem:[#allocation3 + $0x80] sm:$0xff]  ;;  %v589_v12 = vld [vmem:[#allocation3 + $0x88] sm:$0xff]  ;;  %354 = vperm.xlu0 %4246, %v344_v7   ;;  %359 = vperm.xlu1 %4247, %v345_v8   ;;  %v4581_v17 = vpack.c.bf16 %v572_v10, %v571_v9  ;;  %v573_v20 = vld [vmem:[#allocation3 + $0x10] sm:$0xff] }
  0x53   : > { %s2635_s17 = sshll.u32 %s5246_s20, 2  ;;  %v340_v13 = vld [vmem:[%s5216_s2 + $0x8] sm:$0xff]  ;;  %v343_v14 = vld [vmem:[%s5217_s3] sm:$0xff]  ;;  %v4584_v18 = vpack.c.bf16 %v589_v12, %v588_v11  ;;  %v574_v21 = vld [vmem:[#allocation3 + $0x18] sm:$0xff] }
  0x54   : > { %s334_s23 = scalar_lea.vmem %s5214_s0, %s2635_s17  ;;  %v1617_v15 = vld [vmem:[%s5218_s4] sm:$0xff]  ;;  %v590_v22 = vld [vmem:[#allocation3 + $0x90] sm:$0xff]  ;;  %v591_v23 = vld [vmem:[#allocation3 + $0x98] sm:$0xff]  ;;  %v4608_v27 = vpack.c.bf16 %v574_v21, %v573_v20  ;;  %s327_s17 = sand.u32 1, %s4368_s28  }
  0x55   : > { %v337_v2 = vld [vmem:[%s334_s23] sm:$0xff]  ;;  %v338_v3 = vld [vmem:[%s334_s23 + $0x8] sm:$0xff]  ;;  %v346_v24 = vld [vmem:[%s5217_s3 + $0x18] sm:$0xff]  ;;  %v4610_v28 = vpack.c.bf16 %v591_v23, %v590_v22  ;;  %s2633_s22 = sshll.u32 %s327_s17, 5  ;;  %s2659_s23 = sshll.u32 %s4453_s9, 9 }
  0x56   : > { %v369_v4 = vcombine.high %v337_v2, %v337_v2  ;;  %v370_v5 = vcombine.high %v338_v3, %v338_v3  ;;  %349 = vperm.xlu0 %4246, %v343_v14   ;;  %1620 = vperm.xlu1 %4247, %v1617_v15   ;;  %v1810_v25 = vld [vmem:[%s5220_s6] sm:$0xff]  ;;  %v342_v26 = vld [vmem:[%s5216_s2 + $0x18] sm:$0xff]  ;;  %v576_v30 = vld [vmem:[#allocation3 + $0x28] sm:$0xff]  ;;  %s5152_s21 = scalar_lea.vmem [#allocation8], %s2633_s22  ;;  %s5169_s10 = scalar_lea.hbm %s5222_s8, %s2659_s23 }
  0x57   : > { %v575_v29 = vld [vmem:[#allocation3 + $0x20] sm:$0xff]  ;;  %v593_v32 = vld [vmem:[#allocation3 + $0xa8] sm:$0xff]  ;;  %v577_v35 = vld [vmem:[#allocation3 + $0x30] sm:$0xff]  ;;  %s2544_s24 = sshll.u32 %s5152_s21, 4  ;;  %s2530_s12 = scalar_lea.sflag [#allocation5], %s327_s17  ;;  %s5171_s24 = int_to_ptr.vmem [resolvable:$true] %s2544_s24 }
  0x58   : > { %2636 = vmatprep.subr.msk.mxu0 %vm384_vm0, %v369_v4  ;;  %2642 = vmatprep.subr.msk.mxu1 %vm384_vm0, %v370_v5  ;;  %v592_v31 = vld [vmem:[#allocation3 + $0xa0] sm:$0xff]  ;;  %v4618_v33 = vpack.c.bf16 %v576_v30, %v575_v29  ;;  %v578_v36 = vld [vmem:[#allocation3 + $0x38] sm:$0xff]  ;;  %v594_v37 = vld [vmem:[#allocation3 + $0xb0] sm:$0xff]  ;;  %s4306_s13 = scalar_lea.vmem %s5171_s24, 512  ;;  %s4386_s9 = smov [#allocation8]  }
  0x59   : > { %2637 = vmatpush1.msk.msra.mxu0 %vm384_vm0, %v337_v2  ;;  %2643 = vmatpush1.msk.msra.mxu1 %vm384_vm0, %v338_v3  ;;  %v4620_v34 = vpack.c.bf16 %v593_v32, %v592_v31  ;;  %v595_v38 = vld [vmem:[#allocation3 + $0xb8] sm:$0xff]  ;;  %v4626_v39 = vpack.c.bf16 %v578_v36, %v577_v35  ;;  %v579_v41 = vld [vmem:[#allocation3 + $0x40] sm:$0xff]  ;;  %v580_v42 = vld [vmem:[#allocation3 + $0x48] sm:$0xff]  ;;  %p4307_p12 = scmp.ne.s32.totalorder %s5171_s24, %s4306_s13  ;;  %s4310_s18 = sshll.u32 %s4386_s9, 4  ;;  %s4311_s18 = int_to_ptr.vmem [resolvable:$false] %s4310_s18 }
  0x5a   : > { %2638 = vmatmul.mubr.msk.f32.vlgmr.msra.gmra.mrb[0].mxu0 %vm371_vm1, %v339_v6  ;;  %2644 = vmatmul.mubr.msk.f32.vlgmr.msra.gmra.mrb[0].mxu1 %vm371_vm1, %v339_v6  ;;  %v4628_v40 = vpack.c.bf16 %v595_v38, %v594_v37  ;;  %v596_v43 = vld [vmem:[#allocation3 + $0xc0] sm:$0xff]  ;;  %v597_v44 = vld [vmem:[#allocation3 + $0xc8] sm:$0xff]  ;;  %v4634_v45 = vpack.c.bf16 %v580_v42, %v579_v41  ;;  %v581_v47 = vld [vmem:[#allocation3 + $0x50] sm:$0xff]  ;;  %s4312_s19 = scalar_lea.vmem %s4311_s18, 1024  ;;  %p4313_p4 = scmp.lt.s32.totalorder %s5171_s24, %s4311_s18 }
  0x5b   : > { %463 = vmatprep.mubr.f32.mxu0 %v4382_v0  ;;  %552 = vmatprep.mubr.f32.mxu1 %v4382_v0  ;;  %v4636_v46 = vpack.c.bf16 %v597_v44, %v596_v43  ;;  %v582_v48 = vld [vmem:[#allocation3 + $0x58] sm:$0xff]  ;;  %v598_v49 = vld [vmem:[#allocation3 + $0xd0] sm:$0xff]  ;;  %v583_v53 = vld [vmem:[#allocation3 + $0x60] sm:$0xff]  ;;  %p4308_p2 = pnand %p4307_p12, %p5238_p1  ;;  %p4314_p7 = scmp.lt.s32.totalorder %s4312_s19, %s4306_s13 }
  0x5c   : > { %3724 = vmatprep.subr.bf16.mxu1 %v4384_v16  ;;  %3700 = vmatprep.subr.bf16.mxu0 %v4384_v16  ;;  %v599_v50 = vld [vmem:[#allocation3 + $0xd8] sm:$0xff]  ;;  %v4642_v51 = vpack.c.bf16 %v582_v48, %v581_v47  ;;  %v584_v54 = vld [vmem:[#allocation3 + $0x68] sm:$0xff]  ;;  %v600_v55 = vld [vmem:[#allocation3 + $0xe0] sm:$0xff] }
  0x5d   : > { %3726 = vmatpush3.bf16.msra.mxu1 %v4581_v17  ;;  %3702 = vmatpush3.bf16.msra.mxu0 %v4584_v18  ;;  %v4644_v52 = vpack.c.bf16 %v599_v50, %v598_v49  ;;  %v601_v56 = vld [vmem:[#allocation3 + $0xe8] sm:$0xff]  ;;  %v4650_v57 = vpack.c.bf16 %v584_v54, %v583_v53  ;;  %v585_v59 = vld [vmem:[#allocation3 + $0x70] sm:$0xff]  ;;  %v586_v60 = vld [vmem:[#allocation3 + $0x78] sm:$0xff]  ;;  %p4309_p3 = pneg %p4308_p2  ;;  %p4315_p8 = por %p4314_p7, %p4313_p4 }
  0x5e   : > { %2639 = vmatmul.mubr.msk.f32.gmra.mrb[2].mxu0 %vm371_vm1, %v340_v13  ;;  %2645 = vmatmul.mubr.msk.f32.gmra.mrb[2].mxu1 %vm371_vm1, %v340_v13  ;;  %v4652_v58 = vpack.c.bf16 %v601_v56, %v600_v55  ;;  %v4658_v61 = vpack.c.bf16 %v586_v60, %v585_v59  ;;  %v602_v62 = vld [vmem:[#allocation3 + $0xf0] sm:$0xff]  ;;  %v603_v63 = vld [vmem:[#allocation3 + $0xf8] sm:$0xff]  ;;  %v745_v9 = vld [vmem:[#allocation3 + $0x100] sm:$0xff] }
  0x5f   : > { %469 = vmatprep.mubr.f32.mxu0 %v4382_v0  ;;  %558 = vmatprep.mubr.f32.mxu1 %v4382_v0  ;;  %v4664_v1 = vpack.c.bf16 %v603_v63, %v602_v62  ;;  %v746_v10 = vld [vmem:[#allocation3 + $0x108] sm:$0xff]  ;;  %v747_v20 = vld [vmem:[#allocation3 + $0x110] sm:$0xff]  ;;  %v748_v21 = vld [vmem:[#allocation3 + $0x118] sm:$0xff]  ;;  %p4316_p11 = pnand %p4315_p8, %p4309_p3 }
  0x60   : > { %364 = vperm.xlu0 %4246, %v346_v24   ;;  %1988 = vperm.xlu1 %4247, %v1810_v25   ;;  %v4686_v13 = vpack.c.bf16 %v746_v10, %v745_v9  ;;  %v4700_v24 = vpack.c.bf16 %v748_v21, %v747_v20  ;;  %v749_v29 = vld [vmem:[#allocation3 + $0x120] sm:$0xff]  ;;  %v750_v30 = vld [vmem:[#allocation3 + $0x128] sm:$0xff]  ;;  %v751_v42 = vld [vmem:[#allocation3 + $0x130] sm:$0xff] }
  0x61   : > { %3727 = vmatprep.subr.bf16.mxu1 %v4384_v16  ;;  %3703 = vmatprep.subr.bf16.mxu0 %v4384_v16  ;;  %v4716_v36 = vpack.c.bf16 %v750_v30, %v749_v29  ;;  %v752_v43 = vld [vmem:[#allocation3 + $0x138] sm:$0xff]  ;;  %v753_v48 = vld [vmem:[#allocation3 + $0x140] sm:$0xff]  ;;  %v754_v49 = vld [vmem:[#allocation3 + $0x148] sm:$0xff] }
  0x62   : > { %2640 = vmatmul.mubr.msk.f32.gmra.mrb[4].mxu0 %vm371_vm1, %v341_v19  ;;  %2646 = vmatmul.mubr.msk.f32.gmra.mrb[4].mxu1 %vm371_vm1, %v341_v19  ;;  %v4730_v47 = vpack.c.bf16 %v752_v43, %v751_v42  ;;  %v4736_v50 = vpack.c.bf16 %v754_v49, %v753_v48  ;;  %v755_v53 = vld [vmem:[#allocation3 + $0x150] sm:$0xff]  ;;  %v756_v54 = vld [vmem:[#allocation3 + $0x158] sm:$0xff]  ;;  %v757_v56 = vld [vmem:[#allocation3 + $0x160] sm:$0xff] }
  0x63   : > { %475 = vmatprep.mubr.f32.mxu0 %v4382_v0  ;;  %564 = vmatprep.mubr.f32.mxu1 %v4382_v0  ;;  %v4742_v55 = vpack.c.bf16 %v756_v54, %v755_v53  ;;  %v758_v59 = vld [vmem:[#allocation3 + $0x168] sm:$0xff]  ;;  %v759_v62 = vld [vmem:[#allocation3 + $0x170] sm:$0xff]  ;;  %v760_v63 = vld [vmem:[#allocation3 + $0x178] sm:$0xff] }
  0x64   : > { %3729 = vmatpush3.bf16.msra.mxu1 %v4608_v27  ;;  %3705 = vmatpush3.bf16.msra.mxu0 %v4610_v28  ;;  %v4748_v60 = vpack.c.bf16 %v758_v59, %v757_v56  ;;  %v1811_v20 = vld [vmem:[#allocation6] sm:$0xff]  ;;  %v1812_v21 = vld [vmem:[#allocation6 + $0x8] sm:$0xff]  ;;  %v1814_v29 = vld [vmem:[#allocation6 + $0x18] sm:$0xff] }
  0x65   : > { %3730 = vmatprep.subr.bf16.mxu1 %v4384_v16  ;;  %3706 = vmatprep.subr.bf16.mxu0 %v4384_v16  ;;  %v4943_v30 = vld [vmem:[%s5219_s5 + $0x8] sm:$0xff]  ;;  %v4955_v42 = vld [vmem:[%s5219_s5 + $0x10] sm:$0xff]  ;;  %v1818_v48 = vld [vmem:[#allocation6 + $0x38] sm:$0xff] }
  0x66   : > { %2641 = vmatmul.mubr.msk.f32.gmra.mrb[6].mxu0 %vm371_vm1, %v342_v26  ;;  %2647 = vmatmul.mubr.msk.f32.gmra.mrb[6].mxu1 %vm371_vm1, %v342_v26  ;;  %v1820_v53 = vld [vmem:[#allocation6 + $0x48] sm:$0xff]  ;;  %v1822_v56 = vld [vmem:[#allocation6 + $0x58] sm:$0xff] }
  0x67   : > { %3067 = vmatprep.mubr.msk.f32.mxu1 %vm4385_vm2, %v4382_v0  ;;  %3032 = vmatprep.mubr.msk.f32.mxu0 %vm4385_vm2, %v4382_v0 }
  0x68   : > { %3732 = vmatpush3.bf16.msra.mxu1 %v4618_v33  ;;  %3708 = vmatpush3.bf16.msra.mxu0 %v4620_v34 }
  0x69   : > { %3733 = vmatprep.subr.bf16.mxu1 %v4384_v16  ;;  %3709 = vmatprep.subr.bf16.mxu0 %v4384_v16 }
  0x6c   : > { %3735 = vmatpush3.bf16.msra.mxu1 %v4626_v39  ;;  %3711 = vmatpush3.bf16.msra.mxu0 %v4628_v40 }
  0x6d   : > { %3736 = vmatprep.subr.bf16.mxu1 %v4384_v16  ;;  %3712 = vmatprep.subr.bf16.mxu0 %v4384_v16 }
  0x70   : > { %3738 = vmatpush3.bf16.msra.mxu1 %v4634_v45  ;;  %3714 = vmatpush3.bf16.msra.mxu0 %v4636_v46 }
  0x71   : > { %3739 = vmatprep.subr.bf16.mxu1 %v4384_v16  ;;  %3715 = vmatprep.subr.bf16.mxu0 %v4384_v16 }
  0x74   : > { %3741 = vmatpush3.bf16.msra.mxu1 %v4642_v51  ;;  %3717 = vmatpush3.bf16.msra.mxu0 %v4644_v52 }
  0x75   : > { %3742 = vmatprep.subr.bf16.mxu1 %v4384_v16  ;;  %3718 = vmatprep.subr.bf16.mxu0 %v4384_v16 }
  0x78   : > { %3744 = vmatpush3.bf16.msra.mxu1 %v4650_v57  ;;  %3720 = vmatpush3.bf16.msra.mxu0 %v4652_v58 }
  0x79   : > { %3745 = vmatprep.subr.bf16.mxu1 %v4384_v16  ;;  %3721 = vmatprep.subr.bf16.mxu0 %v4384_v16 }
  0x7c   : > { %3747 = vmatpush3.bf16.msra.mxu1 %v4658_v61  ;;  %3723 = vmatpush3.bf16.msra.mxu0 %v4664_v1 }
  0x7d   : > { %3772 = vmatprep.subr.bf16.mxu1 %v4384_v16  ;;  %3748 = vmatprep.subr.bf16.mxu0 %v4384_v16 }
  0xd1   : > { %v4672_v2 = vpop.permute.xlu0 %354  ;;  %v4760_v9 = vpop.permute.xlu1 %359 }
  0xd5   : > { %v4674_v3 = vpop.permute.xlu0 %349 }
  0xdf   : > { %v4710_v31 = vpop.permute.xlu0 %364 }
 0x12d   : > { %v459_v4 = vpop.f32.mrb[0].mxu0  ;;  %v4676_v5 = vpop.f32.mrb[0].mxu1 }
 0x12e   : > { %v460_v6 = vadd.f32 %v459_v4, %v4674_v3  ;;  %v4679_v7 = vpop.f32.mrb[1].mxu0  ;;  %v4681_v8 = vpop.f32.mrb[1].mxu1  ;;  %v4754_v4 = vpack.c.bf16 %v760_v63, %v759_v62  ;;  %v1823_v63 = vld [vmem:[#allocation6 + $0x60] sm:$0xff] }
 0x130   : > { %3068 = vmatmul.mubr.f32.vlgmr.msra.gmra.mrb[8].mxu1 %v460_v6 }
 0x131   : > { %3774 = vmatpush3.bf16.msra.mxu1 %v4584_v18  ;;  %v465_v11 = vpop.f32.mrb[2].mxu0  ;;  %v4684_v12 = vpop.f32.mrb[2].mxu1  ;;  %3137 = vmatprep.mubr.msk.f32.mxu1 %vm4385_vm2, %v4382_v0 }
 0x132   : > { %v466_v14 = vadd.f32 %v465_v11, %v4672_v2  ;;  %v4691_v15 = vpop.f32.mrb[3].mxu0  ;;  %v4693_v19 = vpop.f32.mrb[3].mxu1  ;;  %3775 = vmatprep.subr.bf16.mxu1 %v4384_v16 }
 0x133   : > { %v468_v6 = vadd.f32 %v4691_v15, %v4672_v2  ;;  %v555_v15 = vadd.f32 %v4684_v12, %v4672_v2 }
 0x134   : > { %3033 = vmatmul.mubr.f32.vlgmr.msra.gmra.mrb[8].mxu0 %v466_v14  ;;  %v462_v14 = vadd.f32 %v4679_v7, %v4674_v3  ;;  %v549_v7 = vadd.f32 %v4676_v5, %v4674_v3 }
 0x135   : > { %3750 = vmatpush3.bf16.msra.mxu0 %v4686_v13  ;;  %3777 = vmatpush3.bf16.msra.mxu1 %v4610_v28  ;;  %v471_v22 = vpop.f32.mrb[4].mxu0  ;;  %v4698_v23 = vpop.f32.mrb[4].mxu1 }
 0x136   : > { %3751 = vmatprep.subr.bf16.mxu0 %v4384_v16  ;;  %3778 = vmatprep.subr.bf16.mxu1 %v4384_v16  ;;  %v4704_v25 = vpop.f32.mrb[5].mxu0  ;;  %v4706_v26 = vpop.f32.mrb[5].mxu1  ;;  %v472_v10 = vadd.f32 %v471_v22, %v4760_v9 }
 0x137   : > { %3102 = vmatprep.mubr.msk.f32.mxu0 %vm4385_vm2, %v4382_v0  ;;  %v474_v11 = vadd.f32 %v4704_v25, %v4760_v9  ;;  %v4934_v25 = vpack.c.bf16 %v1812_v21, %v1811_v20  ;;  %v1905_v21 = vld [vmem:[#allocation6 + $0x130] sm:$0xff] }
 0x139   : > { %3753 = vmatpush3.bf16.msra.mxu0 %v4700_v24  ;;  %3780 = vmatpush3.bf16.msra.mxu1 %v4620_v34  ;;  %v4714_v32 = vpop.f32.mrb[6].mxu0  ;;  %v566_v35 = vpop.f32.mrb[6].mxu1 }
 0x13a   : > { %v4719_v37 = vadd.f32 %v566_v35, %v4710_v31  ;;  %v4721_v38 = vpop.f32.mrb[7].mxu0  ;;  %v568_v41 = vpop.f32.mrb[7].mxu1  ;;  %3754 = vmatprep.subr.bf16.mxu0 %v4384_v16  ;;  %3781 = vmatprep.subr.bf16.mxu1 %v4384_v16 }
 0x13b   : > { %v4726_v44 = vadd.f32 %v568_v41, %v4710_v31  ;;  %v1816_v41 = vld [vmem:[#allocation6 + $0x28] sm:$0xff] }
 0x13d   : > { %3756 = vmatpush3.bf16.msra.mxu0 %v4716_v36  ;;  %3783 = vmatpush3.bf16.msra.mxu1 %v4628_v40 }
 0x13e   : > { %3757 = vmatprep.subr.bf16.mxu0 %v4384_v16  ;;  %3784 = vmatprep.subr.bf16.mxu1 %v4384_v16 }
 0x141   : > { %3759 = vmatpush3.bf16.msra.mxu0 %v4730_v47  ;;  %3786 = vmatpush3.bf16.msra.mxu1 %v4636_v46 }
 0x142   : > { %3760 = vmatprep.subr.bf16.mxu0 %v4384_v16  ;;  %3787 = vmatprep.subr.bf16.mxu1 %v4384_v16 }
 0x145   : > { %3762 = vmatpush3.bf16.msra.mxu0 %v4736_v50  ;;  %3789 = vmatpush3.bf16.msra.mxu1 %v4644_v52 }
 0x146   : > { %3763 = vmatprep.subr.bf16.mxu0 %v4384_v16  ;;  %3790 = vmatprep.subr.bf16.mxu1 %v4384_v16 }
 0x149   : > { %3765 = vmatpush3.bf16.msra.mxu0 %v4742_v55  ;;  %3792 = vmatpush3.bf16.msra.mxu1 %v4652_v58 }
 0x14a   : > { %3766 = vmatprep.subr.bf16.mxu0 %v4384_v16  ;;  %3793 = vmatprep.subr.bf16.mxu1 %v4384_v16 }
 0x14d   : > { %3768 = vmatpush3.bf16.msra.mxu0 %v4748_v60  ;;  %3795 = vmatpush3.bf16.msra.mxu1 %v4664_v1 }
 0x14e   : > { %3769 = vmatprep.subr.bf16.mxu0 %v4384_v16  ;;  %3820 = vmatprep.subr.bf16.mxu1 %v4384_v16 }
 0x150   : > { %3138 = vmatmul.mubr.f32.vlgmr.msra.gmra.mrb[10].mxu1 %v468_v6 }
 0x151   : > { %3771 = vmatpush3.bf16.msra.mxu0 %v4754_v4  ;;  %3822 = vmatpush3.bf16.msra.mxu1 %v4686_v13 }
 0x152   : > { %3796 = vmatprep.subr.bf16.mxu0 %v4384_v16  ;;  %3823 = vmatprep.subr.bf16.mxu1 %v4384_v16 }
 0x153   : > { %3207 = vmatprep.mubr.msk.f32.mxu1 %vm4385_vm2, %v4382_v0 }
 0x154   : > { %3103 = vmatmul.mubr.f32.vlgmr.msra.gmra.mrb[10].mxu0 %v472_v10 }
 0x155   : > { %3798 = vmatpush3.bf16.msra.mxu0 %v4581_v17  ;;  %3825 = vmatpush3.bf16.msra.mxu1 %v4700_v24 }
 0x156   : > { %3799 = vmatprep.subr.bf16.mxu0 %v4384_v16  ;;  %3826 = vmatprep.subr.bf16.mxu1 %v4384_v16 }
 0x157   : > { %3172 = vmatprep.mubr.msk.f32.mxu0 %vm4385_vm2, %v4382_v0 }
 0x159   : > { %3801 = vmatpush3.bf16.msra.mxu0 %v4608_v27  ;;  %3828 = vmatpush3.bf16.msra.mxu1 %v4716_v36 }
 0x15a   : > { %3802 = vmatprep.subr.bf16.mxu0 %v4384_v16  ;;  %3829 = vmatprep.subr.bf16.mxu1 %v4384_v16 }
 0x15d   : > { %3804 = vmatpush3.bf16.msra.mxu0 %v4618_v33  ;;  %3831 = vmatpush3.bf16.msra.mxu1 %v4730_v47 }
 0x15e   : > { %3805 = vmatprep.subr.bf16.mxu0 %v4384_v16  ;;  %3832 = vmatprep.subr.bf16.mxu1 %v4384_v16 }
 0x161   : > { %3807 = vmatpush3.bf16.msra.mxu0 %v4626_v39  ;;  %3834 = vmatpush3.bf16.msra.mxu1 %v4736_v50 }
 0x162   : > { %3808 = vmatprep.subr.bf16.mxu0 %v4384_v16  ;;  %3835 = vmatprep.subr.bf16.mxu1 %v4384_v16 }
 0x165   : > { %3810 = vmatpush3.bf16.msra.mxu0 %v4634_v45  ;;  %3837 = vmatpush3.bf16.msra.mxu1 %v4742_v55 }
 0x166   : > { %3811 = vmatprep.subr.bf16.mxu0 %v4384_v16  ;;  %3838 = vmatprep.subr.bf16.mxu1 %v4384_v16 }
 0x169   : > { %3813 = vmatpush3.bf16.msra.mxu0 %v4642_v51  ;;  %3840 = vmatpush3.bf16.msra.mxu1 %v4748_v60 }
 0x16a   : > { %3814 = vmatprep.subr.bf16.mxu0 %v4384_v16  ;;  %3841 = vmatprep.subr.bf16.mxu1 %v4384_v16 }
 0x16d   : > { %3816 = vmatpush3.bf16.msra.mxu0 %v4650_v57  ;;  %3843 = vmatpush3.bf16.msra.mxu1 %v4754_v4 }
 0x16e   : > { %3817 = vmatprep.subr.bf16.mxu0 %v4384_v16  ;;  %3868 = vmatprep.subr.bf16.mxu1 %v4384_v16 }
 0x170   : > { %3208 = vmatmul.mubr.f32.vlgmr.msra.gmra.mrb[12].mxu1 %v474_v11 }
 0x171   : > { %3819 = vmatpush3.bf16.msra.mxu0 %v4658_v61  ;;  %3870 = vmatpush3.bf16.msra.mxu1 %v4581_v17 }
 0x172   : > { %3844 = vmatprep.subr.bf16.mxu0 %v4384_v16  ;;  %3871 = vmatprep.subr.bf16.mxu1 %v4384_v16 }
 0x173   : > { %3277 = vmatprep.mubr.msk.f32.mxu1 %vm4385_vm2, %v4382_v0 }
 0x174   : > { %3173 = vmatmul.mubr.f32.vlgmr.msra.gmra.mrb[12].mxu0 %v462_v14  ;;  %v1825_v14 = vld [vmem:[#allocation6 + $0x70] sm:$0xff] }
 0x175   : > { %3846 = vmatpush3.bf16.msra.mxu0 %v4584_v18  ;;  %3873 = vmatpush3.bf16.msra.mxu1 %v4608_v27 }
 0x176   : > { %3847 = vmatprep.subr.bf16.mxu0 %v4384_v16  ;;  %3874 = vmatprep.subr.bf16.mxu1 %v4384_v16 }
 0x177   : > { %3242 = vmatprep.mubr.msk.f32.mxu0 %vm4385_vm2, %v4382_v0 }
 0x179   : > { %3849 = vmatpush3.bf16.msra.mxu0 %v4610_v28  ;;  %3876 = vmatpush3.bf16.msra.mxu1 %v4618_v33 }
 0x17a   : > { %3850 = vmatprep.subr.bf16.mxu0 %v4384_v16  ;;  %3877 = vmatprep.subr.bf16.mxu1 %v4384_v16 }
 0x17d   : > { %3852 = vmatpush3.bf16.msra.mxu0 %v4620_v34  ;;  %3879 = vmatpush3.bf16.msra.mxu1 %v4626_v39 }
 0x17e   : > { %3853 = vmatprep.subr.bf16.mxu0 %v4384_v16  ;;  %3880 = vmatprep.subr.bf16.mxu1 %v4384_v16 }
 0x181   : > { %3855 = vmatpush3.bf16.msra.mxu0 %v4628_v40  ;;  %3882 = vmatpush3.bf16.msra.mxu1 %v4634_v45 }
 0x182   : > { %3856 = vmatprep.subr.bf16.mxu0 %v4384_v16  ;;  %3883 = vmatprep.subr.bf16.mxu1 %v4384_v16 }
 0x185   : > { %3858 = vmatpush3.bf16.msra.mxu0 %v4636_v46  ;;  %3885 = vmatpush3.bf16.msra.mxu1 %v4642_v51 }
 0x186   : > { %3859 = vmatprep.subr.bf16.mxu0 %v4384_v16  ;;  %3886 = vmatprep.subr.bf16.mxu1 %v4384_v16 }
 0x189   : > { %3861 = vmatpush3.bf16.msra.mxu0 %v4644_v52  ;;  %3888 = vmatpush3.bf16.msra.mxu1 %v4650_v57 }
 0x18a   : > { %3862 = vmatprep.subr.bf16.mxu0 %v4384_v16  ;;  %3889 = vmatprep.subr.bf16.mxu1 %v4384_v16 }
 0x18d   : > { %3864 = vmatpush3.bf16.msra.mxu0 %v4652_v58  ;;  %3891 = vmatpush3.bf16.msra.mxu1 %v4658_v61 }
 0x18e   : > { %3865 = vmatprep.subr.bf16.mxu0 %v4384_v16  ;;  %3916 = vmatprep.subr.bf16.mxu1 %v4384_v16 }
 0x190   : > { %3278 = vmatmul.mubr.f32.vlgmr.msra.gmra.mrb[14].mxu1 %v549_v7  ;;  %v1826_v7 = vld [vmem:[#allocation6 + $0x78] sm:$0xff] }
 0x191   : > { %3867 = vmatpush3.bf16.msra.mxu0 %v4664_v1  ;;  %3918 = vmatpush3.bf16.msra.mxu1 %v4584_v18  ;;  %v557_v18 = vadd.f32 %v4693_v19, %v4672_v2 }
 0x192   : > { %3892 = vmatprep.subr.bf16.mxu0 %v4384_v16  ;;  %3919 = vmatprep.subr.bf16.mxu1 %v4384_v16 }
 0x193   : > { %3347 = vmatprep.mubr.msk.f32.mxu1 %vm4385_vm2, %v4382_v0 }
 0x194   : > { %3243 = vmatmul.mubr.f32.vlgmr.msra.gmra.mrb[14].mxu0 %v555_v15  ;;  %v4982_v15 = vpack.c.bf16 %v1826_v7, %v1825_v14 }
 0x195   : > { %3894 = vmatpush3.bf16.msra.mxu0 %v4686_v13  ;;  %3921 = vmatpush3.bf16.msra.mxu1 %v4610_v28  ;;  %v561_v28 = vadd.f32 %v4698_v23, %v4760_v9 }
 0x196   : > { %3895 = vmatprep.subr.bf16.mxu0 %v4384_v16  ;;  %3922 = vmatprep.subr.bf16.mxu1 %v4384_v16 }
 0x197   : > { %3312 = vmatprep.mubr.msk.f32.mxu0 %vm4385_vm2, %v4382_v0 }
 0x199   : > { %3897 = vmatpush3.bf16.msra.mxu0 %v4700_v24  ;;  %3924 = vmatpush3.bf16.msra.mxu1 %v4620_v34 }
 0x19a   : > { %3898 = vmatprep.subr.bf16.mxu0 %v4384_v16  ;;  %3925 = vmatprep.subr.bf16.mxu1 %v4384_v16 }
 0x19d   : > { %3900 = vmatpush3.bf16.msra.mxu0 %v4716_v36  ;;  %3927 = vmatpush3.bf16.msra.mxu1 %v4628_v40 }
 0x19e   : > { %3901 = vmatprep.subr.bf16.mxu0 %v4384_v16  ;;  %3928 = vmatprep.subr.bf16.mxu1 %v4384_v16 }
 0x1a1   : > { %3903 = vmatpush3.bf16.msra.mxu0 %v4730_v47  ;;  %3930 = vmatpush3.bf16.msra.mxu1 %v4636_v46 }
 0x1a2   : > { %3904 = vmatprep.subr.bf16.mxu0 %v4384_v16  ;;  %3931 = vmatprep.subr.bf16.mxu1 %v4384_v16 }
 0x1a5   : > { %3906 = vmatpush3.bf16.msra.mxu0 %v4736_v50  ;;  %3933 = vmatpush3.bf16.msra.mxu1 %v4644_v52 }
 0x1a6   : > { %3907 = vmatprep.subr.bf16.mxu0 %v4384_v16  ;;  %3934 = vmatprep.subr.bf16.mxu1 %v4384_v16 }
 0x1a9   : > { %3909 = vmatpush3.bf16.msra.mxu0 %v4742_v55  ;;  %3936 = vmatpush3.bf16.msra.mxu1 %v4652_v58 }
 0x1aa   : > { %3910 = vmatprep.subr.bf16.mxu0 %v4384_v16  ;;  %3937 = vmatprep.subr.bf16.mxu1 %v4384_v16 }
 0x1ad   : > { %3912 = vmatpush3.bf16.msra.mxu0 %v4748_v60  ;;  %3939 = vmatpush3.bf16.msra.mxu1 %v4664_v1 }
 0x1ae   : > { %3913 = vmatprep.subr.bf16.mxu0 %v4384_v16  ;;  %3964 = vmatprep.subr.bf16.mxu1 %v4384_v16 }
 0x1b0   : > { %3348 = vmatmul.mubr.f32.vlgmr.msra.gmra.mrb[16].mxu1 %v557_v18 }
 0x1b1   : > { %3915 = vmatpush3.bf16.msra.mxu0 %v4754_v4  ;;  %3966 = vmatpush3.bf16.msra.mxu1 %v4686_v13  ;;  %v4925_v13 = vpop.permute.xlu1 %1620 }
 0x1b2   : > { %3940 = vmatprep.subr.bf16.mxu0 %v4384_v16  ;;  %3967 = vmatprep.subr.bf16.mxu1 %v4384_v16 }
 0x1b3   : > { %3417 = vmatprep.mubr.msk.f32.mxu1 %vm4385_vm2, %v4382_v0 }
 0x1b4   : > { %3313 = vmatmul.mubr.f32.vlgmr.msra.gmra.mrb[16].mxu0 %v561_v28 }
 0x1b5   : > { %3942 = vmatpush3.bf16.msra.mxu0 %v4581_v17  ;;  %3969 = vmatpush3.bf16.msra.mxu1 %v4700_v24  ;;  %v563_v17 = vadd.f32 %v4706_v26, %v4760_v9  ;;  %v4932_v24 = vld [vmem:[%s5219_s5] sm:$0xff]  ;;  %v1813_v26 = vld [vmem:[#allocation6 + $0x10] sm:$0xff] }
 0x1b6   : > { %3943 = vmatprep.subr.bf16.mxu0 %v4384_v16  ;;  %3970 = vmatprep.subr.bf16.mxu1 %v4384_v16  ;;  %v4946_v35 = vpack.c.bf16 %v1814_v29, %v1813_v26  ;;  %v1908_v26 = vld [vmem:[#allocation6 + $0x148] sm:$0xff] }
 0x1b7   : > { %3382 = vmatprep.mubr.msk.f32.mxu0 %vm4385_vm2, %v4382_v0 }
 0x1b9   : > { %3945 = vmatpush3.bf16.msra.mxu0 %v4608_v27  ;;  %3972 = vmatpush3.bf16.msra.mxu1 %v4716_v36  ;;  %v551_v27 = vadd.f32 %v4681_v8, %v4674_v3  ;;  %v1815_v36 = vld [vmem:[#allocation6 + $0x20] sm:$0xff] }
 0x1ba   : > { %3946 = vmatprep.subr.bf16.mxu0 %v4384_v16  ;;  %3973 = vmatprep.subr.bf16.mxu1 %v4384_v16  ;;  %v4958_v43 = vpack.c.bf16 %v1816_v41, %v1815_v36  ;;  %v1910_v36 = vld [vmem:[#allocation6 + $0x158] sm:$0xff] }
 0x1bd   : > { %3948 = vmatpush3.bf16.msra.mxu0 %v4618_v33  ;;  %3975 = vmatpush3.bf16.msra.mxu1 %v4730_v47  ;;  %v1817_v47 = vld [vmem:[#allocation6 + $0x30] sm:$0xff] }
 0x1be   : > { %3949 = vmatprep.subr.bf16.mxu0 %v4384_v16  ;;  %3976 = vmatprep.subr.bf16.mxu1 %v4384_v16  ;;  %v4964_v49 = vpack.c.bf16 %v1818_v48, %v1817_v47  ;;  %v1912_v47 = vld [vmem:[#allocation6 + $0x168] sm:$0xff] }
 0x1c1   : > { %3951 = vmatpush3.bf16.msra.mxu0 %v4626_v39  ;;  %3978 = vmatpush3.bf16.msra.mxu1 %v4736_v50  ;;  %v1819_v50 = vld [vmem:[#allocation6 + $0x40] sm:$0xff] }
 0x1c2   : > { %3952 = vmatprep.subr.bf16.mxu0 %v4384_v16  ;;  %3979 = vmatprep.subr.bf16.mxu1 %v4384_v16  ;;  %v4970_v54 = vpack.c.bf16 %v1820_v53, %v1819_v50  ;;  %v1913_v50 = vld [vmem:[#allocation6 + $0x170] sm:$0xff]  ;;  %v1914_v53 = vld [vmem:[#allocation6 + $0x178] sm:$0xff] }
 0x1c5   : > { %3954 = vmatpush3.bf16.msra.mxu0 %v4634_v45  ;;  %3981 = vmatpush3.bf16.msra.mxu1 %v4742_v55  ;;  %v1821_v55 = vld [vmem:[#allocation6 + $0x50] sm:$0xff] }
 0x1c6   : > { %3955 = vmatprep.subr.bf16.mxu0 %v4384_v16  ;;  %3982 = vmatprep.subr.bf16.mxu1 %v4384_v16 }
 0x1c9   : > { %3957 = vmatpush3.bf16.msra.mxu0 %v4642_v51  ;;  %3984 = vmatpush3.bf16.msra.mxu1 %v4748_v60  ;;  %v4974_v60 = vpack.c.bf16 %v1822_v56, %v1821_v55  ;;  %v5027_v55 = vpack.c.bf16 %v1914_v53, %v1913_v50 }
 0x1ca   : > { %3958 = vmatprep.subr.bf16.mxu0 %v4384_v16  ;;  %3985 = vmatprep.subr.bf16.mxu1 %v4384_v16 }
 0x1cd   : > { %3960 = vmatpush3.bf16.msra.mxu0 %v4650_v57  ;;  %3987 = vmatpush3.bf16.msra.mxu1 %v4754_v4  ;;  %v1824_v4 = vld [vmem:[#allocation6 + $0x68] sm:$0xff] }
 0x1ce   : > { %3961 = vmatprep.subr.bf16.mxu0 %v4384_v16  ;;  %v4978_v9 = vpack.c.bf16 %v1824_v4, %v1823_v63 }
 0x1d0   : > { %3418 = vmatmul.mubr.f32.vlgmr.msra.gmra.mrb[18].mxu1 %v563_v17 }
 0x1d1   : > { %3963 = vmatpush3.bf16.msra.mxu0 %v4658_v61  ;;  %1791 = vmatprep.mubr.f32.mxu1 %v4382_v0 }
 0x1d4   : > { %3383 = vmatmul.mubr.f32.vlgmr.msra.gmra.mrb[18].mxu0 %v551_v27 }
 0x1d5   : > { %1708 = vmatprep.mubr.f32.mxu0 %v4382_v0 }
 0x203   : > { %v740_v33 = vpop.f32.mrb[8].mxu1 }
 0x204   : > { %v3069_v34 = vpop.f32.mrb[9].mxu1 }
 0x207   : > { %v670_v39 = vpop.f32.mrb[8].mxu0 }
 0x208   : > { %v741_v40 = vadd.f32 %v740_v33, %v670_v39  ;;  %v3034_v45 = vpop.f32.mrb[9].mxu0 }
 0x223   : > { %v931_v46 = vpop.f32.mrb[10].mxu1 }
 0x224   : > { %v3139_v51 = vpop.f32.mrb[11].mxu1 }
 0x227   : > { %v827_v52 = vpop.f32.mrb[10].mxu0 }
 0x228   : > { %v831_v57 = vadd.f32 %v827_v52, %v741_v40  ;;  %v3104_v58 = vpop.f32.mrb[11].mxu0 }
 0x229   : > { %v1899_v58 = vld [vmem:[#allocation6 + $0x100] sm:$0xff] }
 0x22a   : > { %v1623_v8 = vadd.f32 %v4925_v13, %v831_v57 }
 0x22c   : > { %v1627_v23 = vmax.f32 %v1623_v8, 0.0  ;;  %v1903_v8 = vld [vmem:[#allocation6 + $0x120] sm:$0xff] }
 0x243   : > { %v1087_v1 = vpop.f32.mrb[12].mxu1 }
 0x244   : > { %v3209_v61 = vpop.f32.mrb[13].mxu1 }
 0x247   : > { %v1001_v2 = vpop.f32.mrb[12].mxu0 }
 0x248   : > { %v1002_v5 = vadd.f32 %v1001_v2, %v931_v46  ;;  %v3174_v12 = vpop.f32.mrb[13].mxu0 }
 0x249   : > { %v1901_v12 = vld [vmem:[#allocation6 + $0x110] sm:$0xff] }
 0x24a   : > { %v1091_v3 = vadd.f32 %v1087_v1, %v1002_v5  ;;  %v1900_v1 = vld [vmem:[#allocation6 + $0x108] sm:$0xff] }
 0x24b   : > { %v4989_v5 = vpack.c.bf16 %v1900_v1, %v1899_v58 }
 0x24c   : > { %v1624_v19 = vadd.f32 %v4925_v13, %v1091_v3  ;;  %v1902_v3 = vld [vmem:[#allocation6 + $0x118] sm:$0xff] }
 0x24e   : > { %v1628_v22 = vmax.f32 %v1624_v19, 0.0  ;;  %v1904_v19 = vld [vmem:[#allocation6 + $0x128] sm:$0xff] }
 0x24f   : > { %v5003_v20 = vpack.c.bf16 %v1904_v19, %v1903_v8 }
 0x250   : > { %1644 = vmatprep.subr.mxu0 %v1628_v22  ;;  %v1906_v22 = vld [vmem:[#allocation6 + $0x138] sm:$0xff] }
 0x251   : > { %1645 = vmatpush1.msra.mxu0 %v1627_v23  ;;  %v5009_v23 = vpack.c.bf16 %v1906_v22, %v1905_v21 }
 0x252   : > { %2648 = vmatmul.mubr.msk.f32.vlgmr.msra.gmra.mrb[20].mxu0 %vm1634_vm3, %v4932_v24  ;;  %3988 = vmatprep.subr.bf16.mxu0 %v4384_v16 }
 0x253   : > { %1714 = vmatprep.mubr.f32.mxu0 %v4382_v0  ;;  %3990 = vmatpush3.bf16.msra.mxu0 %v4934_v25 }
 0x254   : > { %3991 = vmatprep.subr.bf16.mxu0 %v4384_v16 }
 0x256   : > { %2649 = vmatmul.mubr.msk.f32.gmra.mrb[22].mxu0 %vm1634_vm3, %v4943_v30 }
 0x257   : > { %1720 = vmatprep.mubr.f32.mxu0 %v4382_v0  ;;  %3993 = vmatpush3.bf16.msra.mxu0 %v4946_v35 }
 0x258   : > { %3994 = vmatprep.subr.bf16.mxu0 %v4384_v16 }
 0x25a   : > { %2650 = vmatmul.mubr.msk.f32.gmra.mrb[24].mxu0 %vm1634_vm3, %v4955_v42 }
 0x25b   : > { %3996 = vmatpush3.bf16.msra.mxu0 %v4958_v43  ;;  %3452 = vmatprep.mubr.msk.f32.mxu0 %vm4385_vm2, %v4382_v0 }
 0x25c   : > { %3997 = vmatprep.subr.bf16.mxu0 %v4384_v16 }
 0x25f   : > { %3999 = vmatpush3.bf16.msra.mxu0 %v4964_v49 }
 0x260   : > { %4000 = vmatprep.subr.bf16.mxu0 %v4384_v16 }
 0x263   : > { %v1261_v59 = vpop.f32.mrb[14].mxu1  ;;  %4002 = vmatpush3.bf16.msra.mxu0 %v4970_v54 }
 0x264   : > { %v3279_v62 = vpop.f32.mrb[15].mxu1  ;;  %4003 = vmatprep.subr.bf16.mxu0 %v4384_v16 }
 0x267   : > { %v1191_v6 = vpop.f32.mrb[14].mxu0  ;;  %4005 = vmatpush3.bf16.msra.mxu0 %v4974_v60 }
 0x268   : > { %v1262_v10 = vadd.f32 %v1261_v59, %v1191_v6  ;;  %v3244_v11 = vpop.f32.mrb[15].mxu0  ;;  %4006 = vmatprep.subr.bf16.mxu0 %v4384_v16 }
 0x26b   : > { %4008 = vmatpush3.bf16.msra.mxu0 %v4978_v9 }
 0x26c   : > { %4009 = vmatprep.subr.bf16.mxu0 %v4384_v16 }
 0x26f   : > { %4011 = vmatpush3.bf16.msra.mxu0 %v4982_v15 }
 0x270   : > { %4036 = vmatprep.subr.bf16.mxu0 %v4384_v16 }
 0x283   : > { %v1451_v18 = vpop.f32.mrb[16].mxu1 }
 0x284   : > { %v3349_v28 = vpop.f32.mrb[17].mxu1 }
 0x287   : > { %v1347_v17 = vpop.f32.mrb[16].mxu0 }
 0x288   : > { %v1351_v27 = vadd.f32 %v1347_v17, %v1262_v10  ;;  %v3314_v33 = vpop.f32.mrb[17].mxu0 }
 0x28a   : > { %v1625_v52 = vadd.f32 %v4925_v13, %v1351_v27 }
 0x28c   : > { %v1629_v2 = vmax.f32 %v1625_v52, 0.0 }
 0x2a3   : > { %v1607_v34 = vpop.f32.mrb[18].mxu1 }
 0x2a4   : > { %v3419_v39 = vpop.f32.mrb[19].mxu1 }
 0x2a7   : > { %v1521_v40 = vpop.f32.mrb[18].mxu0 }
 0x2a8   : > { %v1522_v45 = vadd.f32 %v1521_v40, %v1451_v18  ;;  %v3384_v46 = vpop.f32.mrb[19].mxu0 }
 0x2aa   : > { %v1611_v51 = vadd.f32 %v1607_v34, %v1522_v45 }
 0x2ac   : > { %v1626_v57 = vadd.f32 %v4925_v13, %v1611_v51  ;;  %v4996_v13 = vpack.c.bf16 %v1902_v3, %v1901_v12 }
 0x2ae   : > { %v1630_v61 = vmax.f32 %v1626_v57, 0.0 }
 0x2b0   : > { %1727 = vmatprep.subr.mxu1 %v1630_v61 }
 0x2b1   : > { %1728 = vmatpush1.msra.mxu1 %v1629_v2 }
 0x2b2   : > { %2651 = vmatmul.mubr.msk.f32.vlgmr.msra.gmra.mrb[20].mxu1 %vm1634_vm3, %v4932_v24  ;;  %4012 = vmatprep.subr.bf16.mxu1 %v4384_v16  ;;  %v1907_v24 = vld [vmem:[#allocation6 + $0x140] sm:$0xff] }
 0x2b3   : > { %1797 = vmatprep.mubr.f32.mxu1 %v4382_v0  ;;  %4014 = vmatpush3.bf16.msra.mxu1 %v4989_v5  ;;  %v5015_v29 = vpack.c.bf16 %v1908_v26, %v1907_v24 }
 0x2b4   : > { %4015 = vmatprep.subr.bf16.mxu1 %v4384_v16 }
 0x2b6   : > { %2652 = vmatmul.mubr.msk.f32.gmra.mrb[22].mxu1 %vm1634_vm3, %v4943_v30  ;;  %v1909_v30 = vld [vmem:[#allocation6 + $0x150] sm:$0xff] }
 0x2b7   : > { %1803 = vmatprep.mubr.f32.mxu1 %v4382_v0  ;;  %4017 = vmatpush3.bf16.msra.mxu1 %v4996_v13  ;;  %v5019_v41 = vpack.c.bf16 %v1910_v36, %v1909_v30 }
 0x2b8   : > { %4018 = vmatprep.subr.bf16.mxu1 %v4384_v16 }
 0x2ba   : > { %2653 = vmatmul.mubr.msk.f32.gmra.mrb[24].mxu1 %vm1634_vm3, %v4955_v42  ;;  %v1911_v42 = vld [vmem:[#allocation6 + $0x160] sm:$0xff] }
 0x2bb   : > { %4020 = vmatpush3.bf16.msra.mxu1 %v5003_v20  ;;  %3487 = vmatprep.mubr.msk.f32.mxu1 %vm4385_vm2, %v4382_v0  ;;  %v5023_v48 = vpack.c.bf16 %v1912_v47, %v1911_v42 }
 0x2bc   : > { %4021 = vmatprep.subr.bf16.mxu1 %v4384_v16 }
 0x2bf   : > { %4023 = vmatpush3.bf16.msra.mxu1 %v5009_v23 }
 0x2c0   : > { %4024 = vmatprep.subr.bf16.mxu1 %v4384_v16 }
 0x2c3   : > { %4026 = vmatpush3.bf16.msra.mxu1 %v5015_v29 }
 0x2c4   : > { %4027 = vmatprep.subr.bf16.mxu1 %v4384_v16 }
 0x2c7   : > { %4029 = vmatpush3.bf16.msra.mxu1 %v5019_v41 }
 0x2c8   : > { %4030 = vmatprep.subr.bf16.mxu1 %v4384_v16 }
 0x2cb   : > { %4032 = vmatpush3.bf16.msra.mxu1 %v5023_v48 }
 0x2cc   : > { %4033 = vmatprep.subr.bf16.mxu1 %v4384_v16 }
 0x2cf   : > { %4035 = vmatpush3.bf16.msra.mxu1 %v5027_v55 }
 0x2d0   : > { %4060 = vmatprep.subr.bf16.mxu1 %v4384_v16 }
 0x325   : > { %v1710_v56 = vpop.f32.mrb[20].mxu0 }
 0x326   : > { %3453 = vmatmul.mubr.f32.vlgmr.msra.gmra.mrb[26].mxu0 %v1710_v56  ;;  %v1712_v59 = vpop.f32.mrb[21].mxu0 }
 0x327   : > { %4038 = vmatpush3.bf16.msra.mxu0 %v4934_v25  ;;  %3522 = vmatprep.mubr.msk.f32.mxu0 %vm4385_vm2, %v4382_v0 }
 0x328   : > { %4039 = vmatprep.subr.bf16.mxu0 %v4384_v16 }
 0x329   : > { %v5036_v62 = vpop.f32.mrb[22].mxu0 }
 0x32a   : > { %v5038_v63 = vpop.f32.mrb[23].mxu0 }
 0x32b   : > { %4041 = vmatpush3.bf16.msra.mxu0 %v4946_v35 }
 0x32c   : > { %4042 = vmatprep.subr.bf16.mxu0 %v4384_v16 }
 0x32d   : > { %v1722_v4 = vpop.f32.mrb[24].mxu0 }
 0x32e   : > { %3488 = vmatmul.mubr.f32.vlgmr.msra.gmra.mrb[26].mxu1 %v1722_v4  ;;  %v1724_v6 = vpop.f32.mrb[25].mxu0 }
 0x32f   : > { %4044 = vmatpush3.bf16.msra.mxu0 %v4958_v43  ;;  %4062 = vmatpush3.bf16.msra.mxu1 %v4989_v5 }
 0x330   : > { %4045 = vmatprep.subr.bf16.mxu0 %v4384_v16  ;;  %4063 = vmatprep.subr.bf16.mxu1 %v4384_v16 }
 0x331   : > { %3557 = vmatprep.mubr.msk.f32.mxu1 %vm4385_vm2, %v4382_v0 }
 0x333   : > { %4047 = vmatpush3.bf16.msra.mxu0 %v4964_v49  ;;  %4065 = vmatpush3.bf16.msra.mxu1 %v4996_v13 }
 0x334   : > { %4048 = vmatprep.subr.bf16.mxu0 %v4384_v16  ;;  %4066 = vmatprep.subr.bf16.mxu1 %v4384_v16 }
 0x337   : > { %4050 = vmatpush3.bf16.msra.mxu0 %v4970_v54  ;;  %4068 = vmatpush3.bf16.msra.mxu1 %v5003_v20 }
 0x338   : > { %4051 = vmatprep.subr.bf16.mxu0 %v4384_v16  ;;  %4069 = vmatprep.subr.bf16.mxu1 %v4384_v16 }
 0x33b   : > { %4053 = vmatpush3.bf16.msra.mxu0 %v4974_v60  ;;  %4071 = vmatpush3.bf16.msra.mxu1 %v5009_v23 }
 0x33c   : > { %4054 = vmatprep.subr.bf16.mxu0 %v4384_v16  ;;  %4072 = vmatprep.subr.bf16.mxu1 %v4384_v16 }
 0x33f   : > { %4056 = vmatpush3.bf16.msra.mxu0 %v4978_v9  ;;  %4074 = vmatpush3.bf16.msra.mxu1 %v5015_v29 }
 0x340   : > { %4057 = vmatprep.subr.bf16.mxu0 %v4384_v16  ;;  %4075 = vmatprep.subr.bf16.mxu1 %v4384_v16 }
 0x343   : > { %4059 = vmatpush3.bf16.msra.mxu0 %v4982_v15  ;;  %4077 = vmatpush3.bf16.msra.mxu1 %v5019_v41 }
 0x344   : > { %4078 = vmatprep.subr.bf16.mxu1 %v4384_v16  ;;  %4084 = vmatprep.subr.bf16.mxu0 %v4384_v16 }
 0x346   : > { %3523 = vmatmul.mubr.f32.vlgmr.msra.gmra.mrb[28].mxu0 %v1712_v59 }
 0x347   : > { %4080 = vmatpush3.bf16.msra.mxu1 %v5023_v48  ;;  %4086 = vmatpush3.bf16.msra.mxu0 %v4934_v25 }
 0x348   : > { %4081 = vmatprep.subr.bf16.mxu1 %v4384_v16  ;;  %4087 = vmatprep.subr.bf16.mxu0 %v4384_v16 }
 0x349   : > { %3592 = vmatprep.mubr.msk.f32.mxu0 %vm4385_vm2, %v4382_v0 }
 0x34b   : > { %4083 = vmatpush3.bf16.msra.mxu1 %v5027_v55  ;;  %4089 = vmatpush3.bf16.msra.mxu0 %v4946_v35 }
 0x34c   : > { %4090 = vmatprep.subr.bf16.mxu0 %v4384_v16  ;;  %4108 = vmatprep.subr.bf16.mxu1 %v4384_v16 }
 0x34e   : > { %3558 = vmatmul.mubr.f32.vlgmr.msra.gmra.mrb[28].mxu1 %v1724_v6 }
 0x34f   : > { %4092 = vmatpush3.bf16.msra.mxu0 %v4958_v43  ;;  %4110 = vmatpush3.bf16.msra.mxu1 %v4989_v5 }
 0x350   : > { %4093 = vmatprep.subr.bf16.mxu0 %v4384_v16  ;;  %4111 = vmatprep.subr.bf16.mxu1 %v4384_v16 }
 0x351   : > { %3627 = vmatprep.mubr.msk.f32.mxu1 %vm4385_vm2, %v4382_v0 }
 0x353   : > { %4095 = vmatpush3.bf16.msra.mxu0 %v4964_v49  ;;  %4113 = vmatpush3.bf16.msra.mxu1 %v4996_v13 }
 0x354   : > { %4096 = vmatprep.subr.bf16.mxu0 %v4384_v16  ;;  %4114 = vmatprep.subr.bf16.mxu1 %v4384_v16 }
 0x357   : > { %4098 = vmatpush3.bf16.msra.mxu0 %v4970_v54  ;;  %4116 = vmatpush3.bf16.msra.mxu1 %v5003_v20 }
 0x358   : > { %4099 = vmatprep.subr.bf16.mxu0 %v4384_v16  ;;  %4117 = vmatprep.subr.bf16.mxu1 %v4384_v16 }
 0x35b   : > { %4101 = vmatpush3.bf16.msra.mxu0 %v4974_v60  ;;  %4119 = vmatpush3.bf16.msra.mxu1 %v5009_v23 }
 0x35c   : > { %4102 = vmatprep.subr.bf16.mxu0 %v4384_v16  ;;  %4120 = vmatprep.subr.bf16.mxu1 %v4384_v16 }
 0x35f   : > { %4104 = vmatpush3.bf16.msra.mxu0 %v4978_v9  ;;  %4122 = vmatpush3.bf16.msra.mxu1 %v5015_v29 }
 0x360   : > { %4105 = vmatprep.subr.bf16.mxu0 %v4384_v16  ;;  %4123 = vmatprep.subr.bf16.mxu1 %v4384_v16 }
 0x363   : > { %4107 = vmatpush3.bf16.msra.mxu0 %v4982_v15  ;;  %4125 = vmatpush3.bf16.msra.mxu1 %v5019_v41 }
 0x364   : > { %4126 = vmatprep.subr.bf16.mxu1 %v4384_v16  ;;  %4132 = vmatprep.subr.bf16.mxu0 %v4384_v16 }
 0x367   : > { %4128 = vmatpush3.bf16.msra.mxu1 %v5023_v48 }
 0x368   : > { %4129 = vmatprep.subr.bf16.mxu1 %v4384_v16 }
 0x36b   : > { %4131 = vmatpush3.bf16.msra.mxu1 %v5027_v55 }
 0x36c   : > { %4156 = vmatprep.subr.bf16.mxu1 %v4384_v16 }
 0x385   : > { %v1793_v10 = vpop.f32.mrb[20].mxu1 }
 0x386   : > { %3593 = vmatmul.mubr.f32.vlgmr.msra.gmra.mrb[30].mxu0 %v1793_v10  ;;  %v1795_v11 = vpop.f32.mrb[21].mxu1 }
 0x387   : > { %4134 = vmatpush3.bf16.msra.mxu0 %v4934_v25  ;;  %3662 = vmatprep.mubr.msk.f32.mxu0 %vm4385_vm2, %v4382_v0 }
 0x388   : > { %4135 = vmatprep.subr.bf16.mxu0 %v4384_v16 }
 0x389   : > { %v5112_v14 = vpop.f32.mrb[22].mxu1 }
 0x38a   : > { %v5114_v7 = vpop.f32.mrb[23].mxu1 }
 0x38b   : > { %4137 = vmatpush3.bf16.msra.mxu0 %v4946_v35 }
 0x38c   : > { %4138 = vmatprep.subr.bf16.mxu0 %v4384_v16 }
 0x38d   : > { %v1805_v18 = vpop.f32.mrb[24].mxu1 }
 0x38e   : > { %3628 = vmatmul.mubr.f32.vlgmr.msra.gmra.mrb[30].mxu1 %v1805_v18  ;;  %v1807_v28 = vpop.f32.mrb[25].mxu1 }
 0x38f   : > { %4140 = vmatpush3.bf16.msra.mxu0 %v4958_v43  ;;  %4158 = vmatpush3.bf16.msra.mxu1 %v4989_v5 }
 0x390   : > { %4141 = vmatprep.subr.bf16.mxu0 %v4384_v16  ;;  %4159 = vmatprep.subr.bf16.mxu1 %v4384_v16 }
 0x391   : > { %3697 = vmatprep.mubr.msk.f32.mxu1 %vm4385_vm2, %v4382_v0 }
 0x393   : > { %4143 = vmatpush3.bf16.msra.mxu0 %v4964_v49  ;;  %4161 = vmatpush3.bf16.msra.mxu1 %v4996_v13 }
 0x394   : > { %4144 = vmatprep.subr.bf16.mxu0 %v4384_v16  ;;  %4162 = vmatprep.subr.bf16.mxu1 %v4384_v16 }
 0x397   : > { %4146 = vmatpush3.bf16.msra.mxu0 %v4970_v54  ;;  %4164 = vmatpush3.bf16.msra.mxu1 %v5003_v20 }
 0x398   : > { %4147 = vmatprep.subr.bf16.mxu0 %v4384_v16  ;;  %4165 = vmatprep.subr.bf16.mxu1 %v4384_v16 }
 0x39b   : > { %4149 = vmatpush3.bf16.msra.mxu0 %v4974_v60  ;;  %4167 = vmatpush3.bf16.msra.mxu1 %v5009_v23  ;;  %v1989_v60 = vpop.permute.xlu1 %1988 }
 0x39c   : > { %4150 = vmatprep.subr.bf16.mxu0 %v4384_v16  ;;  %4168 = vmatprep.subr.bf16.mxu1 %v4384_v16 }
 0x39f   : > { %4152 = vmatpush3.bf16.msra.mxu0 %v4978_v9  ;;  %4170 = vmatpush3.bf16.msra.mxu1 %v5015_v29  ;;  %v478_v9 = vadd.f32 %v4714_v32, %v4710_v31  ;;  %v480_v32 = vadd.f32 %v4721_v38, %v4710_v31 }
 0x3a0   : > { %4153 = vmatprep.subr.bf16.mxu0 %v4384_v16  ;;  %4171 = vmatprep.subr.bf16.mxu1 %v4384_v16 }
 0x3a3   : > { %4155 = vmatpush3.bf16.msra.mxu0 %v4982_v15  ;;  %4173 = vmatpush3.bf16.msra.mxu1 %v5019_v41 }
 0x3a4   : > { %4174 = vmatprep.subr.bf16.mxu1 %v4384_v16 }
 0x3a6   : > { %3663 = vmatmul.mubr.f32.vlgmr.msra.gmra.mrb[32].mxu0 %v1795_v11 }
 0x3a7   : > { %4176 = vmatpush3.bf16.msra.mxu1 %v5023_v48 }
 0x3a8   : > { %4177 = vmatprep.subr.bf16.mxu1 %v4384_v16 }
 0x3ab   : > { %4179 = vmatpush3.bf16.msra.mxu1 %v5027_v55 }
 0x3ae   : > { %3698 = vmatmul.mubr.f32.vlgmr.msra.gmra.mrb[32].mxu1 %v1807_v28 }
 0x3f9   : > { %v1893_v0 = vpop.f32.mrb[26].mxu0 }
 0x3fa   : > { %v1897_v25 = vadd.f32 %v1893_v0, %v5036_v62  ;;  %v3454_v35 = vpop.f32.mrb[27].mxu0 }
 0x401   : > { %v1981_v43 = vpop.f32.mrb[26].mxu1 }
 0x402   : > { %v1985_v49 = vadd.f32 %v1981_v43, %v1897_v25  ;;  %v3489_v54 = vpop.f32.mrb[27].mxu1 }
 0x404   : > { %v1991_v15 = vadd.f32 %v1989_v60, %v1985_v49 }
 0x406   : > { %v1992_v17 = vadd.f32 %v1991_v15, %v478_v9 }
 0x408   : > { %v1993_v16 = vmax.f32 %v1992_v17, 0.0 }
 0x40a   : > { %1994 = vst [vmem:[%s5152_s21] sm:$0xff] %v1993_v16 }
 0x419   : > { %v2077_v27 = vpop.f32.mrb[28].mxu0 }
 0x41a   : > { %v2081_v33 = vadd.f32 %v2077_v27, %v5038_v63  ;;  %v3524_v34 = vpop.f32.mrb[29].mxu0 }
 0x421   : > { %v2164_v39 = vpop.f32.mrb[28].mxu1 }
 0x422   : > { %v2168_v40 = vadd.f32 %v2164_v39, %v2081_v33  ;;  %v3559_v45 = vpop.f32.mrb[29].mxu1 }
 0x424   : > { %v2169_v46 = vadd.f32 %v2168_v40, %v1989_v60 }
 0x426   : > { %v2170_v51 = vadd.f32 %v2169_v46, %v480_v32 }
 0x428   : > { %v2171_v52 = vmax.f32 %v2170_v51, 0.0 }
 0x42a   : > { %2172 = vst [vmem:[%s5152_s21 + $0x8] sm:$0xff] %v2171_v52 }
 0x459   : > { %v2255_v57 = vpop.f32.mrb[30].mxu0 }
 0x45a   : > { %v2259_v58 = vadd.f32 %v2255_v57, %v5112_v14  ;;  %v3594_v1 = vpop.f32.mrb[31].mxu0 }
 0x461   : > { %v2342_v61 = vpop.f32.mrb[30].mxu1 }
 0x462   : > { %v2346_v2 = vadd.f32 %v2342_v61, %v2259_v58  ;;  %v3629_v5 = vpop.f32.mrb[31].mxu1 }
 0x464   : > { %v2347_v12 = vadd.f32 %v2346_v2, %v1989_v60 }
 0x466   : > { %v2348_v3 = vadd.f32 %v2347_v12, %v4719_v37 }
 0x468   : > { %v2349_v13 = vmax.f32 %v2348_v3, 0.0 }
 0x46a   : > { %2350 = vst [vmem:[%s5152_s21 + $0x10] sm:$0xff] %v2349_v13 }
 0x479   : > { %v2433_v31 = vpop.f32.mrb[32].mxu0 }
 0x47a   : > { %v2437_v38 = vadd.f32 %v2433_v31, %v5114_v7  ;;  %v3664_v8 = vpop.f32.mrb[33].mxu0 }
 0x481   : > { %v2520_v19 = vpop.f32.mrb[32].mxu1 }
 0x482   : > { %v2524_v20 = vadd.f32 %v2520_v19, %v2437_v38  ;;  %v3699_v21 = vpop.f32.mrb[33].mxu1 }
 0x484   : > { %v2525_v22 = vadd.f32 %v2524_v20, %v1989_v60 }
 0x486   : > { %v2526_v23 = vadd.f32 %v2525_v22, %v4726_v44 }
 0x488   : > { %v2527_v24 = vmax.f32 %v2526_v23, 0.0 }
 0x48a   : > { %2528 = vst [vmem:[%s5152_s21 + $0x18] sm:$0xff] %v2527_v24 }
 0x48b   : > { %4319 = shalt.err (!%p4316_p11)
}
 0x48c   : > { %s4320_s29 = scalar_lea.hbm %s5169_s10, 512  ;;  %s4324_s17 = scalar_lea.hbm %s5222_s8, 1024 }
 0x48d   : > { %p4321_p13 = scmp.ne.s32.totalorder %s5169_s10, %s4320_s29  ;;  %p4325_p6 = scmp.lt.u32.totalorder %s5169_s10, %s5222_s8 }
 0x48e   : > { %p4326_p9 = scmp.lt.u32.totalorder %s4324_s17, %s4320_s29  ;;  %p4328_p12 = scmp.lt.u32.totalorder %s4320_s29, %s5169_s10 }
 0x48f   : > { %p4322_p5 = pnand %p4321_p13, %p5238_p1 }
 0x490   : > { %p4327_p10 = por %p4326_p9, %p4325_p6 }
 0x491   : > { %p4323_p0 = pneg %p4322_p5 }
 0x492   : > { %p4329_p2 = por %p4328_p12, %p4327_p10 }
 0x494   : > { %p4330_p3 = pnand %p4329_p2, %p4323_p0 }
 0x496   : > { %4333 = shalt.err (!%p4330_p3)
}
 0x497   : > { %4188 = dma.vmem_to_hbm [thread:$0]  (%p5238_p1), %s5171_s24, 512, %s5169_s10, %s2530_s12  }
 0x498 PF: > { %p4205_p4 = scmp.ge.s32.totalorder %s4376_s30, 2  ;;  %s2556_s23 = sand.u32 1, %s4364_s27  }
 0x499   : > { %p5239_p7 = scmp.ne.s32.totalorder %s5230_s16, 0  ;;  %s2557_s25 = scalar_lea.sflag [#allocation5], %s2556_s23 }
 0x49b   : > { %p4198_p8 = pnand %p4205_p4, %p5239_p7 }
 0x49d   : > { %4359 = dma.done.wait (!%p4198_p8), %s2557_s25, 512  }
 0x49e   : > { %4361 = vsyncadd (!%p4198_p8), %s2557_s25, 4294966784  ;;  %s5240_s26 = sld [smem:[#allocation12_spill]]  ;;  %s5241_s29 = sld [smem:[#allocation13_spill]] }
 0x49f   : > { %p20_p11 = scmp.ge.s32.totalorder %s4457_s11, 4   ;;  %s5242_s27 = smov %s4368_s28 }
 0x4a0   : > { %s5244_s30 = smov %s4457_s11 }
 0x4a1   :  { %22 = sbr.rel (!%p20_p11) target bundleno = 5 (0x5), region = 99 }
 0x4a4   : > { %s5243_s28 = smov %s5240_s26 }
 0x4a8   :  { %2562 = vsyncpa [#allocation4], 1 }
 0x4a9   :  { %2564 = vsyncpa [#allocation4 + $0x1], 1 }
 0x4aa   :  { %2565 = vsyncpa [#allocation7], 1 }
 0x4ab   :  { %2566 = vsyncpa [#allocation5], 1 }
 0x4ac   :  { %2568 = vsyncpa [#allocation5 + $0x1], 1 }

</bundles_post_ra>
